<compile_context>
chip_gen: v7x
topology: tpu7x:2x2x1
jax: 0.10.0
libtpu: 0.0.40
codegen_flags: <defaults>
</compile_context>

<pallas_src>
import numpy as np
import jax
import jax.numpy as jnp
from jax.experimental import pallas as pl
from jax.experimental.pallas import tpu as pltpu


def _round_up(x, m):
    return ((x + m - 1) // m) * m


# ----------------------------------------------------------------------------
# Kernel 1: bilinear interpolation from BEV features (tiled over HW)
# ----------------------------------------------------------------------------
_BEV_CALLS = {}


def _get_bev_call(B, Kp, HWp, THW, Cp):
    key = (B, Kp, HWp, THW, Cp)
    if key in _BEV_CALLS:
        return _BEV_CALLS[key]

    n_t = HWp // THW

    def kernel(idx_ref, wts_ref, bev_ref, out_ref, acc_ref):
        # idx_ref/wts_ref: (1, Kp, 8) (4 columns used) ; bev_ref: (1, THW, Cp) bf16
        # out_ref: (1, Kp, Cp) f32 ; acc_ref: (Kp, Cp) f32 scratch
        t = pl.program_id(1)

        @pl.when(t == 0)
        def _():
            acc_ref[...] = jnp.zeros_like(acc_ref)

        idx = idx_ref[0]                       # (Kp, 8) int32 (flat HW indices)
        wts = wts_ref[0]                       # (Kp, 8) f32
        idx_local = idx - t * THW              # shift indices into this tile
        lanes = jax.lax.broadcasted_iota(jnp.int32, (Kp, THW), 1)

        # sparse one-hot weight tile, built in f32 (v5e-safe), cast to bf16 for MXU
        wmat = jnp.zeros((Kp, THW), jnp.float32)
        for c in range(4):
            sel = lanes == idx_local[:, c:c + 1]
            wmat = wmat + jnp.where(sel, wts[:, c:c + 1], 0.0)

        acc_ref[...] += jnp.dot(wmat.astype(jnp.bfloat16), bev_ref[0],
                                preferred_element_type=jnp.float32)

        @pl.when(t == pl.num_programs(1) - 1)
        def _():
            out_ref[0] = acc_ref[...]

    call = pl.pallas_call(
        kernel,
        out_shape=jax.ShapeDtypeStruct((B, Kp, Cp), jnp.float32),
        grid=(B, n_t),
        in_specs=[
            pl.BlockSpec((1, Kp, 8), lambda b, t: (b, 0, 0)),
            pl.BlockSpec((1, Kp, 8), lambda b, t: (b, 0, 0)),
            pl.BlockSpec((1, THW, Cp), lambda b, t: (b, t, 0)),
        ],
        out_specs=pl.BlockSpec((1, Kp, Cp), lambda b, t: (b, 0, 0)),
        scratch_shapes=[pltpu.VMEM((Kp, Cp), jnp.float32)],
        compiler_params=pltpu.CompilerParams(
            dimension_semantics=("parallel", "arbitrary"),
            vmem_limit_bytes=32 * 1024 * 1024),
    )
    _BEV_CALLS[key] = call
    return call


def interpolate_from_bev_features(keypoints, bev_features_nchw, voxel_size,
                                  point_cloud_range, bev_stride, thw_cap=1024):
    """keypoints: (B, K, 3) ; bev_features_nchw: (B, C, H, W)
    Returns padded (B, Kp, Cp) f32, Kp, Cp.  out[:, :K, :C] matches torch."""
    B, K, _ = keypoints.shape
    _, C, H, W = bev_features_nchw.shape
    HW = H * W

    Kp = max(128, _round_up(K, 128))
    Cp = max(128, _round_up(C, 128))
    THW = min(max(128, _round_up(HW, 128)), thw_cap)
    HWp = _round_up(HW, THW)

    # per-keypoint corner index / weight math hoisted out of the kernel (XLA)
    x = ((keypoints[:, :, 0] - point_cloud_range[0]) / voxel_size[0]
         / bev_stride).astype(jnp.float32)
    y = ((keypoints[:, :, 1] - point_cloud_range[1]) / voxel_size[1]
         / bev_stride).astype(jnp.float32)

    x0 = jnp.floor(x).astype(jnp.int32)
    y0 = jnp.floor(y).astype(jnp.int32)
    x1 = jnp.clip(x0 + 1, 0, W - 1)
    y1 = jnp.clip(y0 + 1, 0, H - 1)
    x0 = jnp.clip(x0, 0, W - 1)
    y0 = jnp.clip(y0, 0, H - 1)
    x0f, x1f = x0.astype(jnp.float32), x1.astype(jnp.float32)
    y0f, y1f = y0.astype(jnp.float32), y1.astype(jnp.float32)

    wa = (x1f - x) * (y1f - y)
    wb = (x1f - x) * (y - y0f)
    wc = (x - x0f) * (y1f - y)
    wd = (x - x0f) * (y - y0f)

    ia = y0 * W + x0
    ib = y1 * W + x0
    ic = y0 * W + x1
    idd = y1 * W + x1

    idx = jnp.stack([ia, ib, ic, idd], axis=-1)          # (B, K, 4)
    wts = jnp.stack([wa, wb, wc, wd], axis=-1)           # (B, K, 4)
    # padded keypoints get index -1 (never matches a lane) and weight 0
    idx_p = jnp.full((B, Kp, 8), -1, jnp.int32).at[:, :K, :4].set(idx)
    wts_p = jnp.zeros((B, Kp, 8), jnp.float32).at[:, :K, :4].set(wts)

    # NCHW -> (B, HW, C), flat index = y*W + x ; bf16 halves DMA + VMEM footprint
    bev = jnp.transpose(bev_features_nchw, (0, 2, 3, 1)).reshape(B, HW, C)
    bev_p = jnp.zeros((B, HWp, Cp), jnp.bfloat16).at[:, :HW, :C].set(
        bev.astype(jnp.bfloat16))

    call = _get_bev_call(B, Kp, HWp, THW, Cp)
    return call(idx_p, wts_p, bev_p), Kp, Cp


# ----------------------------------------------------------------------------
# Kernel 2: vsa_point_feature_fusion = Linear(no bias) + BatchNorm1d + ReLU
# ----------------------------------------------------------------------------
_FUSION_CALLS = {}


def _get_fusion_call(Mp, Cin_p, Fp, eps):
    key = (Mp, Cin_p, Fp, float(eps))
    if key in _FUSION_CALLS:
        return _FUSION_CALLS[key]

    def kernel(cnt_ref, x_ref, w_ref, gamma_ref, beta_ref, out_ref):
        # cnt_ref: (1,) int32 in SMEM (valid-row count)
        # x_ref: (Mp, Cin_p) (invalid rows are zero), w_ref: (Cin_p, Fp)
        cnt = jnp.maximum(cnt_ref[0], 1).astype(jnp.float32)
        h = jnp.dot(x_ref[...], w_ref[...], preferred_element_type=jnp.float32)
        s = jnp.sum(h, axis=0, keepdims=True)
        ss = jnp.sum(h * h, axis=0, keepdims=True)
        mean = s / cnt
        var = jnp.maximum(ss / cnt - mean * mean, 0.0)    # biased variance
        inv = jax.lax.rsqrt(var + eps)
        y = (h - mean) * inv * gamma_ref[...] + beta_ref[...]
        out_ref[...] = jnp.maximum(y, 0.0)

    call = pl.pallas_call(
        kernel,
        out_shape=jax.ShapeDtypeStruct((Mp, Fp), jnp.float32),
        grid_spec=pltpu.PrefetchScalarGridSpec(
            num_scalar_prefetch=1,
            grid=(1,),
            in_specs=[
                pl.BlockSpec((Mp, Cin_p), lambda i, cnt: (0, 0)),
                pl.BlockSpec((Cin_p, Fp), lambda i, cnt: (0, 0)),
                pl.BlockSpec((1, Fp), lambda i, cnt: (0, 0)),
                pl.BlockSpec((1, Fp), lambda i, cnt: (0, 0)),
            ],
            out_specs=pl.BlockSpec((Mp, Fp), lambda i, cnt: (0, 0)),
        ),
        compiler_params=pltpu.CompilerParams(
            dimension_semantics=("arbitrary",),
            vmem_limit_bytes=32 * 1024 * 1024),
    )
    _FUSION_CALLS[key] = call
    return call


# ----------------------------------------------------------------------------
# VoxelSetAbstraction
# ----------------------------------------------------------------------------
class VoxelSetAbstractionPallas:
    def __init__(self, model_cfg, voxel_size, point_cloud_range,
                 num_bev_features, num_rawpoint_features, key):
        self.model_cfg = model_cfg
        self.voxel_size = voxel_size
        self.point_cloud_range = point_cloud_range
        self.num_bev_features = num_bev_features
        self.add_ego = bool(model_cfg['add_ego_mask_feature'])

        c_in = 0
        if 'bev' in model_cfg['features_source']:
            c_in += num_bev_features
        if self.add_ego:
            c_in += 1
        self.num_point_features_before_fusion = c_in
        self.num_point_features = model_cfg['num_out_features']
        self.bn_eps = 1e-5

        # deterministic parameter init (Linear no-bias weight, BN gamma/beta)
        k1, _ = jax.random.split(key)
        self.fusion_w = (jax.random.normal(
            k1, (c_in, self.num_point_features), dtype=jnp.float32) * 0.1)
        self.fusion_gamma = jnp.ones((self.num_point_features,), jnp.float32)
        self.fusion_beta = jnp.zeros((self.num_point_features,), jnp.float32)

        # pre-padded (lane-dense, 128-aligned) fusion parameters
        C = num_bev_features
        F = self.num_point_features
        self._cp = max(128, _round_up(C, 128))
        self._cin_p = max(self._cp, _round_up(c_in, 128))
        self._fp = max(128, _round_up(F, 128))
        w_pad = jnp.zeros((self._cin_p, self._fp), jnp.float32)
        w_pad = w_pad.at[:C, :F].set(self.fusion_w[:C])
        if self.add_ego:
            w_pad = w_pad.at[C, :F].set(self.fusion_w[C])   # ego column weight
        self._w_pad = w_pad
        self._gamma_pad = jnp.ones((1, self._fp), jnp.float32).at[0, :F].set(
            self.fusion_gamma)
        self._beta_pad = jnp.zeros((1, self._fp), jnp.float32).at[0, :F].set(
            self.fusion_beta)

        # whole device pipeline compiled once
        self._device_fn = jax.jit(self._device_forward)

    # -- host-side keypoint sampling ------------------------------------------
    def get_sampled_points(self, batch_dict):
        # TODO(synk): furthest_point_sample has no clean Pallas equivalent here;
        # deterministically take the first num_keypoints points per batch.
        batch_size = batch_dict['batch_size']
        points = np.asarray(batch_dict['points'])  # (N, 4) [bs, x, y, z]
        K = self.model_cfg['num_keypoints']
        kp_list = []
        for bs_idx in range(batch_size):
            cur = points[points[:, 0] == bs_idx][:, 1:4]
            if cur.shape[0] < K:
                reps = int(np.ceil(K / max(cur.shape[0], 1)))
                cur = np.tile(cur, (reps, 1))
            kp_list.append(cur[:K][None])
        return np.concatenate(kp_list, axis=0)  # (B, K, 3)

    # -- jitted device pipeline: mask -> BEV interp -> fusion ------------------
    def _device_forward(self, keypoints, spatial_features, bev_stride):
        B, K, _ = keypoints.shape
        C = self.num_bev_features

        kpt_mask = jnp.logical_and(keypoints[..., 2] > 0.5,
                                   keypoints[..., 2] < 4.0)      # (B, K)
        # deterministic replacement for the random fallback; safe for B == 1
        need_fb = jnp.sum(kpt_mask) < 2
        fb = jnp.zeros((B, K), bool).at[:min(B, 2), 0].set(True)
        kpt_mask = jnp.logical_or(kpt_mask, jnp.logical_and(need_fb, fb))

        bev_out, Kp, Cp = interpolate_from_bev_features(
            keypoints, spatial_features, self.voxel_size,
            self.point_cloud_range, bev_stride)                  # (B, Kp, Cp)

        # ---- padded fusion input (stays on device) ----
        rows = B * Kp
        Cin_p, Fp = self._cin_p, self._fp
        mask_pad = jnp.zeros((B, Kp), bool).at[:, :K].set(kpt_mask)
        mask_flat = mask_pad.reshape(rows)

        if Cin_p == Cp:
            x_full = bev_out.reshape(rows, Cp)
        else:
            x_full = jnp.zeros((rows, Cin_p), jnp.float32).at[:, :Cp].set(
                bev_out.reshape(rows, Cp))
        if self.add_ego:
            ego = (jnp.arange(rows) < Kp).astype(jnp.float32)    # batch-0 rows
            x_full = x_full.at[:, C].set(ego)
        # zero invalid rows -> block sums equal valid-row sums (Linear has no bias)
        x_full = jnp.where(mask_flat[:, None], x_full, 0.0)
        m_valid = jnp.sum(mask_flat).astype(jnp.int32).reshape(1)

        fusion_call = _get_fusion_call(rows, Cin_p, Fp, self.bn_eps)
        fused = fusion_call(m_valid, x_full, self._w_pad,
                            self._gamma_pad, self._beta_pad)     # (rows, Fp)
        return bev_out, fused, mask_pad

    # -- full forward ----------------------------------------------------------
    def forward(self, batch_dict):
        B = batch_dict['batch_size']
        K = self.model_cfg['num_keypoints']
        C = self.num_bev_features
        F = self.num_point_features

        keypoints_np = self.get_sampled_points(batch_dict)        # (B, K, 3)
        keypoints = jnp.asarray(keypoints_np, jnp.float32)

        bev_out, fused_full, mask_pad = self._device_fn(
            keypoints, batch_dict['spatial_features'],
            batch_dict['spatial_features_stride'])

        # single end-of-pipeline transfer; variable-length split done on host
        bev_np = np.asarray(bev_out)                              # (B, Kp, Cp)
        Kp = bev_np.shape[1]
        fused_np = np.asarray(fused_full).reshape(B, Kp, self._fp)
        mask_np = np.asarray(mask_pad)

        point_features, point_coords, pbf_list = [], [], []
        for b in range(B):
            sel = mask_np[b, :K]
            point_features.append(jnp.asarray(fused_np[b, :K][sel][:, :F]))
            point_coords.append(jnp.asarray(keypoints_np[b][sel]))
            feats = bev_np[b, :K][sel][:, :C]
            if self.add_ego:
                ego_col = np.full((feats.shape[0], 1),
                                  1.0 if b == 0 else 0.0, np.float32)
                feats = np.concatenate([feats, ego_col], axis=1)
            pbf_list.append(feats)

        batch_dict['point_features_before_fusion'] = jnp.asarray(
            np.concatenate(pbf_list, axis=0))
        batch_dict['point_features'] = point_features
        batch_dict['point_coords'] = point_coords
        return batch_dict


# ----------------------------------------------------------------------------
if __name__ == "__main__":
    key = jax.random.PRNGKey(0)
    k_pts, k_bev, k_param = jax.random.split(key, 3)

    B = 2
    C_BEV = 32
    H = W = 16
    NUM_KEYPOINTS = 64
    N_PER_BATCH = 200

    voxel_size = [1.0, 1.0, 0.5]
    point_cloud_range = [0.0, 0.0, -1.0, 16.0, 16.0, 3.0]

    model_cfg = {
        'features_source': ['bev'],
        'point_source': 'raw_points',
        'num_keypoints': NUM_KEYPOINTS,
        'add_ego_mask_feature': True,
        'enlarge_selection_boxes': False,
        'num_out_features': 32,
        'sa_layer': {},
    }

    # points: (B*N, 4) = [bs_idx, x, y, z]
    xyz = jax.random.uniform(k_pts, (B * N_PER_BATCH, 3), dtype=jnp.float32)
    xyz = xyz * jnp.array([16.0, 16.0, 3.0]) + jnp.array([0.0, 0.0, 0.0])
    bs_idx = jnp.repeat(jnp.arange(B, dtype=jnp.float32), N_PER_BATCH)[:, None]
    points = jnp.concatenate([bs_idx, xyz], axis=1)

    spatial_features = jax.random.normal(k_bev, (B, C_BEV, H, W),
                                         dtype=jnp.float32)

    batch_dict = {
        'batch_size': B,
        'points': points,
        'spatial_features': spatial_features,
        'spatial_features_stride': 1,
    }

    vsa = VoxelSetAbstractionPallas(model_cfg, voxel_size, point_cloud_range,
                                    num_bev_features=C_BEV,
                                    num_rawpoint_features=4,
                                    key=k_param)
    out = vsa.forward(batch_dict)

    for pf, pc in zip(out['point_features'], out['point_coords']):
        jax.block_until_ready(pf)
        jax.block_until_ready(pc)
    jax.block_until_ready(out['point_features_before_fusion'])

    assert out['point_features'][0].shape[-1] == model_cfg['num_out_features']
    assert out['point_coords'][0].shape[-1] == 3
    assert out['point_features_before_fusion'].shape[-1] == C_BEV + 1
    print("KERNEL_OK")
</pallas_src>

<mosaic_0001>
module attributes {stable_mosaic.version = 11 : i64} {
  func.func @kernel(%arg0: i32, %arg1: i32, %arg2: memref<1x128x8xi32, #tpu.memory_space<vmem>>, %arg3: memref<1x128x8xf32, #tpu.memory_space<vmem>>, %arg4: memref<1x256x128xbf16, #tpu.memory_space<vmem>>, %arg5: memref<1x128x128xf32, #tpu.memory_space<vmem>>, %arg6: memref<128x128xf32, #tpu.memory_space<vmem>>) attributes {dimension_semantics = [#tpu.dimension_semantics<parallel>, #tpu.dimension_semantics<arbitrary>], iteration_bounds = array<i64: 2, 1>, scalar_prefetch = 0 : i64, scratch_operands = 1 : i64, tpu.core_type = #tpu.core_type<tc>, window_params = [{transform_indices = @transform_0, window_bounds = array<i64: 1, 128, 8>}, {transform_indices = @transform_1, window_bounds = array<i64: 1, 128, 8>}, {transform_indices = @transform_2, window_bounds = array<i64: 1, 256, 128>}, {transform_indices = @transform_3, window_bounds = array<i64: 1, 128, 128>}]} {
    %c0_i32 = arith.constant 0 : i32
    %0 = arith.cmpi eq, %arg1, %c0_i32 : i32
    %1 = arith.extui %0 : i1 to i32
    %c0_i32_0 = arith.constant 0 : i32
    %2 = arith.cmpi ne, %1, %c0_i32_0 : i32
    scf.if %2 {
      %cst_20 = arith.constant 0.000000e+00 : f32
      %58 = vector.broadcast %cst_20 : f32 to vector<128x128xf32>
      %c0_21 = arith.constant 0 : index
      %c0_22 = arith.constant 0 : index
      %59 = vector.load %arg6[%c0_21, %c0_22] : memref<128x128xf32, #tpu.memory_space<vmem>>, vector<128x128xf32>
      tpu.vector_store %arg6[%c0_21, %c0_22], %58 {strides = array<i32>} : memref<128x128xf32, #tpu.memory_space<vmem>>, vector<128x128xf32>,
    } else {
    }
    %c0 = arith.constant 0 : index
    %c0_1 = arith.constant 0 : index
    %c0_2 = arith.constant 0 : index
    %3 = vector.load %arg2[%c0, %c0_1, %c0_2] : memref<1x128x8xi32, #tpu.memory_space<vmem>>, vector<1x128x8xi32>
    %4 = vector.shape_cast %3 : vector<1x128x8xi32> to vector<128x8xi32>
    %c0_3 = arith.constant 0 : index
    %c0_4 = arith.constant 0 : index
    %c0_5 = arith.constant 0 : index
    %5 = vector.load %arg3[%c0_3, %c0_4, %c0_5] : memref<1x128x8xf32, #tpu.memory_space<vmem>>, vector<1x128x8xf32>
    %6 = vector.shape_cast %5 : vector<1x128x8xf32> to vector<128x8xf32>
    %c256_i32 = arith.constant 256 : i32
    %7 = arith.muli %arg1, %c256_i32 : i32
    %8 = vector.broadcast %7 : i32 to vector<128x8xi32>
    %9 = arith.subi %4, %8 : vector<128x8xi32>
    %10 = tpu.iota {dimensions = array<i32: 1>} : vector<128x256xi32>
    %cst = arith.constant 0.000000e+00 : f32
    %11 = vector.broadcast %cst : f32 to vector<128x256xf32>
    %12 = vector.extract_strided_slice %9 {offsets = [0, 0], sizes = [128, 1], strides = [1, 1]} : vector<128x8xi32> to vector<128x1xi32>
    %13 = vector.broadcast %12 : vector<128x1xi32> to vector<128x256xi32>
    %14 = arith.cmpi eq, %10, %13 : vector<128x256xi32>
    %15 = vector.extract_strided_slice %6 {offsets = [0, 0], sizes = [128, 1], strides = [1, 1]} : vector<128x8xf32> to vector<128x1xf32>
    %cst_6 = arith.constant 0.000000e+00 : f32
    %16 = vector.shape_cast %15 : vector<128x1xf32> to vector<128x1xf32>
    %17 = vector.broadcast %16 : vector<128x1xf32> to vector<128x256xf32>
    %18 = vector.broadcast %cst_6 : f32 to vector<128x256xf32>
    %19 = arith.select %14, %17, %18 : vector<128x256xi1>, vector<128x256xf32>
    %20 = arith.addf %11, %19 : vector<128x256xf32>
    %21 = vector.extract_strided_slice %9 {offsets = [0, 1], sizes = [128, 1], strides = [1, 1]} : vector<128x8xi32> to vector<128x1xi32>
    %22 = vector.broadcast %21 : vector<128x1xi32> to vector<128x256xi32>
    %23 = arith.cmpi eq, %10, %22 : vector<128x256xi32>
    %24 = vector.extract_strided_slice %6 {offsets = [0, 1], sizes = [128, 1], strides = [1, 1]} : vector<128x8xf32> to vector<128x1xf32>
    %cst_7 = arith.constant 0.000000e+00 : f32
    %25 = vector.shape_cast %24 : vector<128x1xf32> to vector<128x1xf32>
    %26 = vector.broadcast %25 : vector<128x1xf32> to vector<128x256xf32>
    %27 = vector.broadcast %cst_7 : f32 to vector<128x256xf32>
    %28 = arith.select %23, %26, %27 : vector<128x256xi1>, vector<128x256xf32>
    %29 = arith.addf %20, %28 : vector<128x256xf32>
    %30 = vector.extract_strided_slice %9 {offsets = [0, 2], sizes = [128, 1], strides = [1, 1]} : vector<128x8xi32> to vector<128x1xi32>
    %31 = vector.broadcast %30 : vector<128x1xi32> to vector<128x256xi32>
    %32 = arith.cmpi eq, %10, %31 : vector<128x256xi32>
    %33 = vector.extract_strided_slice %6 {offsets = [0, 2], sizes = [128, 1], strides = [1, 1]} : vector<128x8xf32> to vector<128x1xf32>
    %cst_8 = arith.constant 0.000000e+00 : f32
    %34 = vector.shape_cast %33 : vector<128x1xf32> to vector<128x1xf32>
    %35 = vector.broadcast %34 : vector<128x1xf32> to vector<128x256xf32>
    %36 = vector.broadcast %cst_8 : f32 to vector<128x256xf32>
    %37 = arith.select %32, %35, %36 : vector<128x256xi1>, vector<128x256xf32>
    %38 = arith.addf %29, %37 : vector<128x256xf32>
    %39 = vector.extract_strided_slice %9 {offsets = [0, 3], sizes = [128, 1], strides = [1, 1]} : vector<128x8xi32> to vector<128x1xi32>
    %40 = vector.broadcast %39 : vector<128x1xi32> to vector<128x256xi32>
    %41 = arith.cmpi eq, %10, %40 : vector<128x256xi32>
    %42 = vector.extract_strided_slice %6 {offsets = [0, 3], sizes = [128, 1], strides = [1, 1]} : vector<128x8xf32> to vector<128x1xf32>
    %cst_9 = arith.constant 0.000000e+00 : f32
    %43 = vector.shape_cast %42 : vector<128x1xf32> to vector<128x1xf32>
    %44 = vector.broadcast %43 : vector<128x1xf32> to vector<128x256xf32>
    %45 = vector.broadcast %cst_9 : f32 to vector<128x256xf32>
    %46 = arith.select %41, %44, %45 : vector<128x256xi1>, vector<128x256xf32>
    %47 = arith.addf %38, %46 : vector<128x256xf32>
    %c0_10 = arith.constant 0 : index
    %c0_11 = arith.constant 0 : index
    %48 = vector.load %arg6[%c0_10, %c0_11] : memref<128x128xf32, #tpu.memory_space<vmem>>, vector<128x128xf32>
    %49 = arith.truncf %47 : vector<128x256xf32> to vector<128x256xbf16>
    %c0_12 = arith.constant 0 : index
    %c0_13 = arith.constant 0 : index
    %c0_14 = arith.constant 0 : index
    %50 = vector.load %arg4[%c0_12, %c0_13, %c0_14] : memref<1x256x128xbf16, #tpu.memory_space<vmem>>, vector<1x256x128xbf16>
    %51 = vector.shape_cast %50 : vector<1x256x128xbf16> to vector<256x128xbf16>
    %cst_15 = arith.constant dense<0.000000e+00> : vector<128x128xf32>
    %52 = tpu.matmul %49, %51, %cst_15 {dimension_numbers = #tpu.dot_dimension_numbers<[1], [0], [0], [1], [0, 0, 1, 1], [], []>} : vector<128x256xbf16>, vector<256x128xbf16>, vector<128x128xf32> -> vector<128x128xf32>
    %53 = arith.addf %48, %52 : vector<128x128xf32>
    %c0_16 = arith.constant 0 : index
    %c0_17 = arith.constant 0 : index
    %54 = vector.load %arg6[%c0_16, %c0_17] : memref<128x128xf32, #tpu.memory_space<vmem>>, vector<128x128xf32>
    tpu.vector_store %arg6[%c0_16, %c0_17], %53 {strides = array<i32>} : memref<128x128xf32, #tpu.memory_space<vmem>>, vector<128x128xf32>,
    %c0_i32_18 = arith.constant 0 : i32
    %55 = arith.cmpi eq, %arg1, %c0_i32_18 : i32
    %56 = arith.extui %55 : i1 to i32
    %c0_i32_19 = arith.constant 0 : i32
    %57 = arith.cmpi ne, %56, %c0_i32_19 : i32
    scf.if %57 {
      %c0_20 = arith.constant 0 : index
      %c0_21 = arith.constant 0 : index
      %58 = vector.load %arg6[%c0_20, %c0_21] : memref<128x128xf32, #tpu.memory_space<vmem>>, vector<128x128xf32>
      %c0_22 = arith.constant 0 : index
      %c0_23 = arith.constant 0 : index
      %c0_24 = arith.constant 0 : index
      %59 = vector.load %arg5[%c0_22, %c0_23, %c0_24] : memref<1x128x128xf32, #tpu.memory_space<vmem>>, vector<1x128x128xf32>
      %60 = vector.shape_cast %59 : vector<1x128x128xf32> to vector<128x128xf32>
      %61 = vector.shape_cast %58 : vector<128x128xf32> to vector<1x128x128xf32>
      tpu.vector_store %arg5[%c0_22, %c0_23, %c0_24], %61 {strides = array<i32>} : memref<1x128x128xf32, #tpu.memory_space<vmem>>, vector<1x128x128xf32>,
    } else {
    }
    return
  }
  func.func @transform_0(%arg0: i32, %arg1: i32) -> (i32, i32, i32) {
    %c0_i32 = arith.constant 0 : i32
    %c0_i32_0 = arith.constant 0 : i32
    %c0_i32_1 = arith.constant 0 : i32
    return %arg0, %c0_i32, %c0_i32_0 : i32, i32, i32
  }
  func.func @transform_1(%arg0: i32, %arg1: i32) -> (i32, i32, i32) {
    %c0_i32 = arith.constant 0 : i32
    %c0_i32_0 = arith.constant 0 : i32
    %c0_i32_1 = arith.constant 0 : i32
    return %arg0, %c0_i32, %c0_i32_0 : i32, i32, i32
  }
  func.func @transform_2(%arg0: i32, %arg1: i32) -> (i32, i32, i32) {
    %c0_i32 = arith.constant 0 : i32
    %c0_i32_0 = arith.constant 0 : i32
    return %arg0, %arg1, %c0_i32 : i32, i32, i32
  }
  func.func @transform_3(%arg0: i32, %arg1: i32) -> (i32, i32, i32) {
    %c0_i32 = arith.constant 0 : i32
    %c0_i32_0 = arith.constant 0 : i32
    %c0_i32_1 = arith.constant 0 : i32
    return %arg0, %c0_i32, %c0_i32_0 : i32, i32, i32
  }
}

module attributes {stable_mosaic.version = 11 : i64} {
  func.func @kernel(%arg0: i32, %arg1: memref<1xi32, #tpu.memory_space<smem>>, %arg2: memref<256x128xf32, #tpu.memory_space<vmem>>, %arg3: memref<128x128xf32, #tpu.memory_space<vmem>>, %arg4: memref<1x128xf32, #tpu.memory_space<vmem>>, %arg5: memref<1x128xf32, #tpu.memory_space<vmem>>, %arg6: memref<256x128xf32, #tpu.memory_space<vmem>>) attributes {dimension_semantics = [#tpu.dimension_semantics<arbitrary>], iteration_bounds = array<i64: 1>, scalar_prefetch = 1 : i64, scratch_operands = 0 : i64, tpu.core_type = #tpu.core_type<tc>, window_params = [{pipeline_mode = #tpu.pipeline_mode<synchronous>, transform_indices = @transform_0, window_bounds = array<i64: 256, 128>}, {pipeline_mode = #tpu.pipeline_mode<synchronous>, transform_indices = @transform_1, window_bounds = array<i64: 128, 128>}, {pipeline_mode = #tpu.pipeline_mode<synchronous>, transform_indices = @transform_2, window_bounds = array<i64: 1, 128>}, {pipeline_mode = #tpu.pipeline_mode<synchronous>, transform_indices = @transform_3, window_bounds = array<i64: 1, 128>}, {pipeline_mode = #tpu.pipeline_mode<synchronous>, transform_indices = @transform_4, window_bounds = array<i64: 256, 128>}]} {
    %c0 = arith.constant 0 : index
    %0 = memref.load %arg1[%c0] : memref<1xi32, #tpu.memory_space<smem>>
    %c1_i32 = arith.constant 1 : i32
    %1 = arith.maxsi %0, %c1_i32 : i32
    %2 = arith.sitofp %1 : i32 to f32
    %c0_0 = arith.constant 0 : index
    %c0_1 = arith.constant 0 : index
    %3 = vector.load %arg2[%c0_0, %c0_1] : memref<256x128xf32, #tpu.memory_space<vmem>>, vector<256x128xf32>
    %c0_2 = arith.constant 0 : index
    %c0_3 = arith.constant 0 : index
    %4 = vector.load %arg3[%c0_2, %c0_3] : memref<128x128xf32, #tpu.memory_space<vmem>>, vector<128x128xf32>
    %cst = arith.constant dense<0.000000e+00> : vector<256x128xf32>
    %5 = tpu.matmul %3, %4, %cst {dimension_numbers = #tpu.dot_dimension_numbers<[1], [0], [0], [1], [0, 0, 1, 1], [], []>} : vector<256x128xf32>, vector<128x128xf32>, vector<256x128xf32> -> vector<256x128xf32>
    %cst_4 = arith.constant dense<0.000000e+00> : vector<128xf32>
    %6 = vector.multi_reduction <add>, %5, %cst_4 [0] : vector<256x128xf32> to vector<128xf32>
    %7 = vector.shape_cast %6 : vector<128xf32> to vector<1x128xf32>
    %8 = arith.mulf %5, %5 : vector<256x128xf32>
    %cst_5 = arith.constant dense<0.000000e+00> : vector<128xf32>
    %9 = vector.multi_reduction <add>, %8, %cst_5 [0] : vector<256x128xf32> to vector<128xf32>
    %10 = vector.shape_cast %9 : vector<128xf32> to vector<1x128xf32>
    %11 = vector.broadcast %2 : f32 to vector<1x128xf32>
    %12 = arith.divf %7, %11 : vector<1x128xf32>
    %13 = vector.broadcast %2 : f32 to vector<1x128xf32>
    %14 = arith.divf %10, %13 : vector<1x128xf32>
    %15 = arith.mulf %12, %12 : vector<1x128xf32>
    %16 = arith.subf %14, %15 : vector<1x128xf32>
    %cst_6 = arith.constant 0.000000e+00 : f32
    %17 = vector.broadcast %cst_6 : f32 to vector<1x128xf32>
    %18 = arith.maximumf %16, %17 : vector<1x128xf32>
    %cst_7 = arith.constant 9.99999974E-6 : f32
    %19 = vector.broadcast %cst_7 : f32 to vector<1x128xf32>
    %20 = arith.addf %18, %19 : vector<1x128xf32>
    %21 = math.rsqrt %20 : vector<1x128xf32>
    %22 = vector.broadcast %12 : vector<1x128xf32> to vector<256x128xf32>
    %23 = arith.subf %5, %22 : vector<256x128xf32>
    %24 = vector.broadcast %21 : vector<1x128xf32> to vector<256x128xf32>
    %25 = arith.mulf %23, %24 : vector<256x128xf32>
    %c0_8 = arith.constant 0 : index
    %c0_9 = arith.constant 0 : index
    %26 = vector.load %arg4[%c0_8, %c0_9] : memref<1x128xf32, #tpu.memory_space<vmem>>, vector<1x128xf32>
    %27 = vector.broadcast %26 : vector<1x128xf32> to vector<256x128xf32>
    %28 = arith.mulf %25, %27 : vector<256x128xf32>
    %c0_10 = arith.constant 0 : index
    %c0_11 = arith.constant 0 : index
    %29 = vector.load %arg5[%c0_10, %c0_11] : memref<1x128xf32, #tpu.memory_space<vmem>>, vector<1x128xf32>
    %30 = vector.broadcast %29 : vector<1x128xf32> to vector<256x128xf32>
    %31 = arith.addf %28, %30 : vector<256x128xf32>
    %cst_12 = arith.constant 0.000000e+00 : f32
    %32 = vector.broadcast %cst_12 : f32 to vector<256x128xf32>
    %33 = arith.maximumf %31, %32 : vector<256x128xf32>
    %c0_13 = arith.constant 0 : index
    %c0_14 = arith.constant 0 : index
    %34 = vector.load %arg6[%c0_13, %c0_14] : memref<256x128xf32, #tpu.memory_space<vmem>>, vector<256x128xf32>
    tpu.vector_store %arg6[%c0_13, %c0_14], %33 {strides = array<i32>} : memref<256x128xf32, #tpu.memory_space<vmem>>, vector<256x128xf32>,
    return
  }
  func.func @transform_0(%arg0: i32, %arg1: memref<1xi32, #tpu.memory_space<smem>>) -> (i32, i32) {
    %c0_i32 = arith.constant 0 : i32
    %c0_i32_0 = arith.constant 0 : i32
    %c0_i32_1 = arith.constant 0 : i32
    return %c0_i32, %c0_i32_0 : i32, i32
  }
  func.func @transform_1(%arg0: i32, %arg1: memref<1xi32, #tpu.memory_space<smem>>) -> (i32, i32) {
    %c0_i32 = arith.constant 0 : i32
    %c0_i32_0 = arith.constant 0 : i32
    %c0_i32_1 = arith.constant 0 : i32
    return %c0_i32, %c0_i32_0 : i32, i32
  }
  func.func @transform_2(%arg0: i32, %arg1: memref<1xi32, #tpu.memory_space<smem>>) -> (i32, i32) {
    %c0_i32 = arith.constant 0 : i32
    %c0_i32_0 = arith.constant 0 : i32
    %c0_i32_1 = arith.constant 0 : i32
    return %c0_i32, %c0_i32_0 : i32, i32
  }
  func.func @transform_3(%arg0: i32, %arg1: memref<1xi32, #tpu.memory_space<smem>>) -> (i32, i32) {
    %c0_i32 = arith.constant 0 : i32
    %c0_i32_0 = arith.constant 0 : i32
    %c0_i32_1 = arith.constant 0 : i32
    return %c0_i32, %c0_i32_0 : i32, i32
  }
  func.func @transform_4(%arg0: i32, %arg1: memref<1xi32, #tpu.memory_space<smem>>) -> (i32, i32) {
    %c0_i32 = arith.constant 0 : i32
    %c0_i32_0 = arith.constant 0 : i32
    %c0_i32_1 = arith.constant 0 : i32
    return %c0_i32, %c0_i32_0 : i32, i32
  }
}

</mosaic_0001>

<bundles_post_ra>
// kernel: _device_forward.2
= control target key start
LH: loop header
LB: loop body
LE: loop exit
PB: predicated region body
PF: predicated region fallthrough
CT: control target
= control target key end

     0   :  { %s1802_s12 = smov 0   ;;  %s1804_s13 = smov 0   ;;  %s2710_s0 = inlined_call_operand.vmem [shape: s32[2,128,8], index: 0, kind: input, shape index: {}]   ;;  %s2711_s1 = inlined_call_operand.vmem [shape: f32[2,128,8], index: 1, kind: input, shape index: {}]   ;;  %s2712_s2 = inlined_call_operand.vmem [shape: bf16[2,256,128], index: 2, kind: input, shape index: {}]   ;;  %s2713_s3 = inlined_call_operand.vmem [shape: f32[2,128,128], index: 3, kind: output, shape index: {}]  }
   0x1   :  { %s1806_s14 = smov 0  }
   0x2 LB: > { %s25_s15 = sadd.s32 1, %s1772_s13  ;;  %p1582_p0 = scmp.ge.s32.totalorder %s1776_s14, 1  ;;  %s1776_s14 = sphi %s1806_s14, %s13_s14   ;;  %s1772_s13 = sphi %s1804_s13, %s2769_s13   ;;  %s1768_s12 = sphi %s1802_s12, %s2768_s12  }
   0x3   : > { %p27_p1 = scmp.ge.s32.totalorder %s25_s15, 2  ;;  %p176_p2 = scmp.lt.s32.totalorder %s1776_s14, 3 }
   0x5   : > { %s2771_s15 = smov (%p27_p1, %s25_s15), 0  ;;  %p177_p3 = pnand %p1582_p0, %p176_p2 }
   0x7   : > { %180 = sbr.rel (%p177_p3) target bundleno = 660 (0x294), region = 32 }
   0xe   : > { %p214_p4 = scmp.lt.s32.totalorder %s1768_s12, 1  ;;  %v1778_v0 = vmov 0   ;;  %v2715_v33 = vmov 1   ;;  %v2714_v34 = vmov 2   ;;  %v2716_v35 = vmov 3  }
   0xf   : > { %1722 = vset.pattern.permute.xlu1 %v1778_v0  ;;  %1721 = vset.pattern.permute.xlu0 %v1778_v0 }
  0x10   : > { %s2773_s12 = smov (!%p214_p4, %s1768_s12), 1 }
  0x11   : > { %s1820_s16 = sshll.u32 %s2773_s12, 7 }
  0x12   : > { %s1826_s19 = scalar_lea.vmem %s2710_s0, %s1820_s16  ;;  %s1854_s22 = scalar_lea.vmem %s2712_s2, %s1820_s16 }
  0x13   : > { %v1829_v1 = vld [vmem:[%s1826_s19 + $0x10] sm:$0xff]  ;;  %v1832_v2 = vld [vmem:[%s1826_s19] sm:$0xff]  ;;  %v1837_v3 = vld [vmem:[%s1826_s19 + $0x18] sm:$0xff]  ;;  %s1900_s25 = scalar_lea.vmem %s2711_s1, %s1820_s16  ;;  %s2683_s28 = scalar_lea.vmem %s2713_s3, %s1820_s16 }
  0x14   : > { %320 = vperm.xlu1 %1722, %v1829_v1   ;;  %314 = vperm.xlu0 %1721, %v1832_v2   ;;  %v1840_v4 = vld [vmem:[%s1826_s19 + $0x8] sm:$0xff]  ;;  %v1848_v6 = vld [vmem:[%s1826_s19 + $0x20] sm:$0xff]  ;;  %v1859_v7 = vld [vmem:[%s1826_s19 + $0x38] sm:$0xff] }
  0x15   : > { %v1845_v5 = vld [vmem:[%s1826_s19 + $0x28] sm:$0xff]  ;;  %v1862_v8 = vld [vmem:[%s1826_s19 + $0x30] sm:$0xff]  ;;  %v1868_v10 = vld [vmem:[%s1826_s19 + $0x40] sm:$0xff] }
  0x16   : > { %v1865_v9 = vld [vmem:[%s1826_s19 + $0x48] sm:$0xff]  ;;  %v1873_v11 = vld [vmem:[%s1826_s19 + $0x58] sm:$0xff]  ;;  %v1876_v12 = vld [vmem:[%s1826_s19 + $0x50] sm:$0xff] }
  0x17   : > { %v1883_v13 = vld [vmem:[%s1826_s19 + $0x68] sm:$0xff]  ;;  %v1886_v14 = vld [vmem:[%s1826_s19 + $0x60] sm:$0xff]  ;;  %v1891_v15 = vld [vmem:[%s1826_s19 + $0x78] sm:$0xff] }
  0x18   : > { %323 = vperm.xlu1 %1722, %v1837_v3   ;;  %317 = vperm.xlu0 %1721, %v1840_v4   ;;  %v1894_v16 = vld [vmem:[%s1826_s19 + $0x70] sm:$0xff]  ;;  %v1905_v17 = vld [vmem:[%s1900_s25 + $0x8] sm:$0xff]  ;;  %v1908_v18 = vld [vmem:[%s1900_s25] sm:$0xff] }
  0x19   : > { %v1913_v19 = vld [vmem:[%s1900_s25 + $0x18] sm:$0xff]  ;;  %v1916_v20 = vld [vmem:[%s1900_s25 + $0x10] sm:$0xff]  ;;  %v1921_v21 = vld [vmem:[%s1900_s25 + $0x28] sm:$0xff] }
  0x1a   : > { %v1924_v22 = vld [vmem:[%s1900_s25 + $0x20] sm:$0xff]  ;;  %v1929_v23 = vld [vmem:[%s1900_s25 + $0x38] sm:$0xff]  ;;  %v1932_v24 = vld [vmem:[%s1900_s25 + $0x30] sm:$0xff] }
  0x1b   : > { %v1937_v25 = vld [vmem:[%s1900_s25 + $0x48] sm:$0xff]  ;;  %v1940_v26 = vld [vmem:[%s1900_s25 + $0x40] sm:$0xff]  ;;  %v1945_v27 = vld [vmem:[%s1900_s25 + $0x58] sm:$0xff] }
  0x1c   : > { %329 = vperm.xlu1 %1722, %v1845_v5   ;;  %326 = vperm.xlu0 %1721, %v1848_v6   ;;  %v1948_v28 = vld [vmem:[%s1900_s25 + $0x50] sm:$0xff]  ;;  %v1953_v29 = vld [vmem:[%s1900_s25 + $0x68] sm:$0xff]  ;;  %v1956_v30 = vld [vmem:[%s1900_s25 + $0x60] sm:$0xff] }
  0x1d   : > { %v1961_v31 = vld [vmem:[%s1900_s25 + $0x78] sm:$0xff]  ;;  %v1964_v32 = vld [vmem:[%s1900_s25 + $0x70] sm:$0xff]  ;;  %v1738_v54 = vld [vmem:[%s1854_s22 + $0x40] sm:$0xff]  }
  0x1e   : > { %v1739_v55 = vld [vmem:[%s1854_s22] sm:$0xff]   ;;  %1613 = vmatprep.subr.bf16.mxu0 %v1738_v54  ;;  %1677 = vmatprep.subr.bf16.mxu1 %v1738_v54  ;;  %v1740_v58 = vld [vmem:[%s1854_s22 + $0x48] sm:$0xff]   ;;  %v1742_v62 = vld [vmem:[%s1854_s22 + $0x50] sm:$0xff]  }
  0x1f   : > { %1614 = vmatpush3.bf16.msra.mxu0 %v1739_v55  ;;  %1685 = vmatpush3.bf16.msra.mxu1 %v1739_v55  ;;  %v1741_v59 = vld [vmem:[%s1854_s22 + $0x8] sm:$0xff]   ;;  %v1743_v63 = vld [vmem:[%s1854_s22 + $0x10] sm:$0xff]   ;;  %v1744_v0 = vld [vmem:[%s1854_s22 + $0x58] sm:$0xff]  }
  0x20   : > { %335 = vperm.xlu1 %1722, %v1859_v7   ;;  %332 = vperm.xlu0 %1721, %v1862_v8  }
  0x21   : > { %1615 = vmatprep.subr.bf16.mxu0 %v1740_v58  ;;  %1678 = vmatprep.subr.bf16.mxu1 %v1740_v58  ;;  %v1747_v58 = vld [vmem:[%s1854_s22 + $0x20] sm:$0xff]  }
  0x23   : > { %1616 = vmatpush3.bf16.msra.mxu0 %v1741_v59  ;;  %1686 = vmatpush3.bf16.msra.mxu1 %v1741_v59 }
  0x24   : > { %341 = vperm.xlu1 %1722, %v1865_v9   ;;  %338 = vperm.xlu0 %1721, %v1868_v10  }
  0x25   : > { %1617 = vmatprep.subr.bf16.mxu0 %v1742_v62  ;;  %1679 = vmatprep.subr.bf16.mxu1 %v1742_v62  ;;  %v1748_v62 = vld [vmem:[%s1854_s22 + $0x68] sm:$0xff]  }
  0x27   : > { %1618 = vmatpush3.bf16.msra.mxu0 %v1743_v63  ;;  %1687 = vmatpush3.bf16.msra.mxu1 %v1743_v63  ;;  %v1749_v63 = vld [vmem:[%s1854_s22 + $0x28] sm:$0xff]  }
  0x28   : > { %347 = vperm.xlu1 %1722, %v1873_v11   ;;  %344 = vperm.xlu0 %1721, %v1876_v12  }
  0x29   : > { %1619 = vmatprep.subr.bf16.mxu0 %v1744_v0  ;;  %1680 = vmatprep.subr.bf16.mxu1 %v1744_v0 }
  0x2c   : > { %353 = vperm.xlu1 %1722, %v1883_v13   ;;  %350 = vperm.xlu0 %1721, %v1886_v14  }
  0x30   : > { %359 = vperm.xlu1 %1722, %v1891_v15   ;;  %356 = vperm.xlu0 %1721, %v1894_v16  }
  0x34   : > { %400 = vperm.xlu1 %1722, %v1905_v17   ;;  %395 = vperm.xlu0 %1721, %v1908_v18  }
  0x38   : > { %410 = vperm.xlu1 %1722, %v1913_v19   ;;  %405 = vperm.xlu0 %1721, %v1916_v20  }
  0x3c   : > { %420 = vperm.xlu1 %1722, %v1921_v21   ;;  %415 = vperm.xlu0 %1721, %v1924_v22  }
  0x40   : > { %430 = vperm.xlu1 %1722, %v1929_v23   ;;  %425 = vperm.xlu0 %1721, %v1932_v24  }
  0x44   : > { %440 = vperm.xlu1 %1722, %v1937_v25   ;;  %435 = vperm.xlu0 %1721, %v1940_v26  }
  0x48   : > { %450 = vperm.xlu1 %1722, %v1945_v27   ;;  %445 = vperm.xlu0 %1721, %v1948_v28  }
  0x4c   : > { %460 = vperm.xlu1 %1722, %v1953_v29   ;;  %455 = vperm.xlu0 %1721, %v1956_v30  }
  0x50   : > { %470 = vperm.xlu1 %1722, %v1961_v31   ;;  %465 = vperm.xlu0 %1721, %v1964_v32  }
  0x54   : > { %1724 = vset.pattern.permute.xlu1 %v2715_v33  ;;  %1723 = vset.pattern.permute.xlu0 %v2715_v33 }
  0x55   : > { %541 = vperm.xlu1 %1724, %v1840_v4   ;;  %538 = vperm.xlu0 %1723, %v1832_v2  }
  0x59   : > { %544 = vperm.xlu1 %1724, %v1829_v1   ;;  %547 = vperm.xlu0 %1723, %v1837_v3  }
  0x5d   : > { %550 = vperm.xlu1 %1724, %v1848_v6   ;;  %553 = vperm.xlu0 %1723, %v1845_v5  }
  0x61   : > { %556 = vperm.xlu1 %1724, %v1862_v8   ;;  %559 = vperm.xlu0 %1723, %v1859_v7  }
  0x65   : > { %562 = vperm.xlu1 %1724, %v1868_v10   ;;  %565 = vperm.xlu0 %1723, %v1865_v9  }
  0x69   : > { %568 = vperm.xlu1 %1724, %v1876_v12   ;;  %571 = vperm.xlu0 %1723, %v1873_v11  }
  0x6d   : > { %574 = vperm.xlu1 %1724, %v1886_v14   ;;  %577 = vperm.xlu0 %1723, %v1883_v13  }
  0x71   : > { %580 = vperm.xlu1 %1724, %v1894_v16   ;;  %583 = vperm.xlu0 %1723, %v1891_v15  }
  0x75   : > { %618 = vperm.xlu1 %1724, %v1908_v18   ;;  %622 = vperm.xlu0 %1723, %v1905_v17  }
  0x79   : > { %650 = vperm.xlu1 %1724, %v1940_v26   ;;  %654 = vperm.xlu0 %1723, %v1937_v25  }
  0x7d   : > { %1725 = vset.pattern.permute.xlu1 %v2714_v34  ;;  %630 = vperm.xlu0 %1723, %v1913_v19  }
  0x7e   : > { %746 = vperm.xlu1 %1725, %v1832_v2  }
  0x81   : > { %634 = vperm.xlu0 %1723, %v1924_v22  }
  0x82   : > { %770 = vperm.xlu1 %1725, %v1868_v10  }
  0x85   : > { %670 = vperm.xlu0 %1723, %v1953_v29  }
  0x86   : > { %773 = vperm.xlu1 %1725, %v1865_v9  }
  0x89   : > { %646 = vperm.xlu0 %1723, %v1929_v23  }
  0x8a   : > { %830 = vperm.xlu1 %1725, %v1905_v17  }
  0x8d   : > { %1734 = vset.pattern.permute.xlu0 %v2714_v34 }
  0x8e   : > { %862 = vperm.xlu1 %1725, %v1937_v25   ;;  %749 = vperm.xlu0 %1734, %v1840_v4  }
  0x92   : > { %1726 = vset.pattern.permute.xlu1 %v2716_v35  ;;  %826 = vperm.xlu0 %1734, %v1908_v18  }
  0x93   : > { %v2004_v36 = vpop.permute.xlu1 %320  ;;  %957 = vperm.xlu1 %1726, %v1840_v4   ;;  %v2007_v37 = vpop.permute.xlu0 %314 }
  0x96   : > { %858 = vperm.xlu0 %1734, %v1940_v26  }
  0x97   : > { %v2010_v38 = vpop.permute.xlu1 %323  ;;  %978 = vperm.xlu1 %1726, %v1868_v10   ;;  %v2013_v39 = vpop.permute.xlu0 %317 }
  0x9a   : > { %752 = vperm.xlu0 %1734, %v1829_v1  }
  0x9b   : > { %v2016_v40 = vpop.permute.xlu1 %329  ;;  %1034 = vperm.xlu1 %1726, %v1908_v18   ;;  %v2019_v41 = vpop.permute.xlu0 %326  ;;  %v1745_v18 = vld [vmem:[%s1854_s22 + $0x18] sm:$0xff]  }
  0x9c   : > { %1620 = vmatpush3.bf16.msra.mxu0 %v1745_v18  ;;  %1688 = vmatpush3.bf16.msra.mxu1 %v1745_v18  ;;  %v1751_v18 = vld [vmem:[%s1854_s22 + $0x30] sm:$0xff]  }
  0x9e   : > { %779 = vperm.xlu0 %1734, %v1873_v11  }
  0x9f   : > { %v2022_v42 = vpop.permute.xlu1 %335  ;;  %1066 = vperm.xlu1 %1726, %v1940_v26   ;;  %v2025_v43 = vpop.permute.xlu0 %332  ;;  %v1746_v26 = vld [vmem:[%s1854_s22 + $0x60] sm:$0xff]  }
  0xa0   : > { %2731 = vst [vmem:[#allocation3_spill] sm:$0xff] %v2022_v42  ;;  %2732 = vst [vmem:[#allocation4_spill] sm:$0xff] %v2025_v43  ;;  %1621 = vmatprep.subr.bf16.mxu0 %v1746_v26  ;;  %1681 = vmatprep.subr.bf16.mxu1 %v1746_v26 }
  0xa1   : > { %1622 = vmatpush3.bf16.msra.mxu0 %v1747_v58  ;;  %1689 = vmatpush3.bf16.msra.mxu1 %v1747_v58  ;;  %v1752_v58 = vld [vmem:[%s1854_s22 + $0x78] sm:$0xff]  }
  0xa2   : > { %838 = vperm.xlu0 %1734, %v1913_v19   ;;  %1623 = vmatprep.subr.bf16.mxu0 %v1748_v62 }
  0xa3   : > { %v2028_v44 = vpop.permute.xlu1 %341  ;;  %1727 = vset.pattern.permute.xlu1 %v2715_v33  ;;  %v2031_v45 = vpop.permute.xlu0 %338  ;;  %1682 = vmatprep.subr.bf16.mxu1 %v1748_v62 }
  0xa4   : > { %626 = vperm.xlu1 %1727, %v1916_v20  }
  0xa5   : > { %1624 = vmatpush3.bf16.msra.mxu0 %v1749_v63  ;;  %1690 = vmatpush3.bf16.msra.mxu1 %v1749_v63 }
  0xa6   : > { %870 = vperm.xlu0 %1734, %v1945_v27  }
  0xa7   : > { %v2035_v46 = vpop.permute.xlu1 %347  ;;  %v2037_v47 = vpop.permute.xlu0 %344 }
  0xa8   : > { %658 = vperm.xlu1 %1727, %v1948_v28  }
  0xaa   : > { %761 = vperm.xlu0 %1734, %v1845_v5  }
  0xab   : > { %v2041_v48 = vpop.permute.xlu1 %353  ;;  %v2043_v49 = vpop.permute.xlu0 %350 }
  0xac   : > { %662 = vperm.xlu1 %1727, %v1945_v27  }
  0xae   : > { %842 = vperm.xlu0 %1734, %v1924_v22  }
  0xaf   : > { %v2047_v50 = vpop.permute.xlu1 %359  ;;  %v2049_v51 = vpop.permute.xlu0 %356 }
  0xb0   : > { %2733 = vst [vmem:[#allocation5_spill] sm:$0xff] %v2047_v50  ;;  %2734 = vst [vmem:[#allocation6_spill] sm:$0xff] %v2049_v51  ;;  %1728 = vset.pattern.permute.xlu1 %v2714_v34 }
  0xb1   : > { %755 = vperm.xlu1 %1728, %v1837_v3  }
  0xb2   : > { %874 = vperm.xlu0 %1734, %v1956_v30  }
  0xb3   : > { %v2054_v52 = vpop.permute.xlu1 %400  ;;  %v2056_v53 = vpop.permute.xlu0 %395 }
  0xb5   : > { %776 = vperm.xlu1 %1728, %v1876_v12  }
  0xb6   : > { %764 = vperm.xlu0 %1734, %v1862_v8  }
  0xb7   : > { %v2062_v56 = vpop.permute.xlu1 %410  ;;  %v2064_v57 = vpop.permute.xlu0 %405 }
  0xb9   : > { %834 = vperm.xlu1 %1728, %v1916_v20  }
  0xba   : > { %791 = vperm.xlu0 %1734, %v1891_v15  }
  0xbb   : > { %v2070_v60 = vpop.permute.xlu1 %420  ;;  %v2072_v61 = vpop.permute.xlu0 %415 }
  0xbd   : > { %866 = vperm.xlu1 %1728, %v1948_v28  }
  0xbe   : > { %854 = vperm.xlu0 %1734, %v1929_v23  }
  0xbf   : > { %v2079_v4 = vpop.permute.xlu1 %430  ;;  %v2081_v10 = vpop.permute.xlu0 %425 }
  0xc0   : > { %2735 = vst [vmem:[#allocation7_spill] sm:$0xff] %v2079_v4  ;;  %2736 = vst [vmem:[#allocation8_spill] sm:$0xff] %v2081_v10 }
  0xc1   : > { %1729 = vset.pattern.permute.xlu1 %v2716_v35 }
  0xc2   : > { %960 = vperm.xlu1 %1729, %v1829_v1   ;;  %886 = vperm.xlu0 %1734, %v1961_v31  }
  0xc3   : > { %v2088_v54 = vpop.permute.xlu1 %440  ;;  %v2090_v55 = vpop.permute.xlu0 %435 }
  0xc6   : > { %984 = vperm.xlu1 %1729, %v1876_v12   ;;  %1736 = vset.pattern.permute.xlu0 %v2716_v35 }
  0xc7   : > { %v2095_v1 = vpop.permute.xlu1 %450  ;;  %954 = vperm.xlu0 %1736, %v1832_v2   ;;  %v2098_v59 = vpop.permute.xlu0 %445  ;;  %v1750_v2 = vld [vmem:[%s1854_s22 + $0x70] sm:$0xff]  }
  0xc8   : > { %1625 = vmatprep.subr.bf16.mxu0 %v1750_v2  ;;  %1683 = vmatprep.subr.bf16.mxu1 %v1750_v2 }
  0xc9   : > { %1626 = vmatpush3.bf16.msra.mxu0 %v1751_v18  ;;  %1691 = vmatpush3.bf16.msra.mxu1 %v1751_v18 }
  0xca   : > { %987 = vperm.xlu1 %1729, %v1873_v11   ;;  %1627 = vmatprep.subr.bf16.mxu0 %v1752_v58 }
  0xcb   : > { %v2103_v12 = vpop.permute.xlu1 %460  ;;  %981 = vperm.xlu0 %1736, %v1865_v9   ;;  %v2106_v0 = vpop.permute.xlu0 %455  ;;  %v1753_v9 = vld [vmem:[%s1854_s22 + $0x38] sm:$0xff]   ;;  %1684 = vmatprep.subr.bf16.mxu1 %v1752_v58  ;;  %v310_v58 = vlaneseq }
  0xcd   : > { %1628 = vmatpush3.bf16.msra.mxu0 %v1753_v9  ;;  %1692 = vmatpush3.bf16.msra.mxu1 %v1753_v9 }
  0xce   : > { %1046 = vperm.xlu1 %1729, %v1913_v19  }
  0xcf   : > { %v2111_v26 = vpop.permute.xlu1 %470  ;;  %1038 = vperm.xlu0 %1736, %v1905_v17   ;;  %v2114_v11 = vpop.permute.xlu0 %465 }
  0xd0   : > { %2737 = vst [vmem:[#allocation9_spill] sm:$0xff] %v2111_v26  ;;  %2738 = vst [vmem:[#allocation10_spill] sm:$0xff] %v2114_v11 }
  0xd2   : > { %1078 = vperm.xlu1 %1729, %v1945_v27  }
  0xd3   : > { %1070 = vperm.xlu0 %1736, %v1937_v25  }
  0xd4   : > { %v2120_v62 = vpop.permute.xlu1 %541  ;;  %v539_v19 = vpop.permute.xlu0 %538 }
  0xd6   : > { %1730 = vset.pattern.permute.xlu1 %v2715_v33 }
  0xd7   : > { %638 = vperm.xlu1 %1730, %v1921_v21   ;;  %963 = vperm.xlu0 %1736, %v1837_v3  }
  0xd8   : > { %v2125_v17 = vpop.permute.xlu1 %544  ;;  %v548_v63 = vpop.permute.xlu0 %547 }
  0xdb   : > { %666 = vperm.xlu1 %1730, %v1956_v30   ;;  %1042 = vperm.xlu0 %1736, %v1916_v20  }
  0xdc   : > { %v2129_v27 = vpop.permute.xlu1 %550  ;;  %v2131_v25 = vpop.permute.xlu0 %553 }
  0xdf   : > { %1731 = vset.pattern.permute.xlu1 %v2714_v34  ;;  %1074 = vperm.xlu0 %1736, %v1948_v28   ;;  %v2149_v34 = vand.u32 127, %v310_v58 }
  0xe0   : > { %v2135_v2 = vpop.permute.xlu1 %556  ;;  %758 = vperm.xlu1 %1731, %v1848_v6   ;;  %v2138_v3 = vpop.permute.xlu0 %559 }
  0xe1   : > { %2739 = vst [vmem:[#allocation11_spill] sm:$0xff] %v2135_v2  ;;  %v2156_v35 = vadd.s32 128, %v2149_v34  ;;  %vm585_vm0 = vcmp.eq.s32.totalorder %v2149_v34, %v539_v19  ;;  %vm377_vm2 = vcmp.eq.s32.totalorder %v2149_v34, %v2031_v45  ;;  %vm591_vm8 = vcmp.eq.s32.totalorder %v2149_v34, %v548_v63 }
  0xe2   : > { %vm369_vm10 = vcmp.eq.s32.totalorder %v2149_v34, %v2019_v41  ;;  %vm593_vm12 = vcmp.eq.s32.totalorder %v2149_v34, %v2129_v27 }
  0xe3   : > { %966 = vperm.xlu0 %1736, %v1848_v6   ;;  %vm586_vm1 = vcmp.eq.s32.totalorder %v2156_v35, %v539_v19  ;;  %vm378_vm3 = vcmp.eq.s32.totalorder %v2156_v35, %v2031_v45  ;;  %v489_v19 = vsel %vm377_vm2, %v2090_v55, 0.0  ;;  %vm592_vm9 = vcmp.eq.s32.totalorder %v2156_v35, %v548_v63 }
  0xe4   : > { %v563_v18 = vpop.permute.xlu1 %562  ;;  %782 = vperm.xlu1 %1731, %v1886_v14   ;;  %v566_v20 = vpop.permute.xlu0 %565  ;;  %v490_v2 = vsel %vm378_vm3, %v2090_v55, 0.0  ;;  %vm370_vm11 = vcmp.eq.s32.totalorder %v2156_v35, %v2019_v41  ;;  %vm594_vm13 = vcmp.eq.s32.totalorder %v2156_v35, %v2129_v27  ;;  %vm379_vm2 = vcmp.eq.s32.totalorder %v2149_v34, %v2028_v44 }
  0xe5   : > { %vm603_vm4 = vcmp.eq.s32.totalorder %v2149_v34, %v566_v20  ;;  %vm604_vm5 = vcmp.eq.s32.totalorder %v2156_v35, %v566_v20  ;;  %vm601_vm6 = vcmp.eq.s32.totalorder %v2149_v34, %v563_v18  ;;  %vm602_vm7 = vcmp.eq.s32.totalorder %v2156_v35, %v563_v18 }
  0xe6   : > { %v482_v63 = vsel %vm370_vm11, %v2072_v61, 0.0  ;;  %vm380_vm3 = vcmp.eq.s32.totalorder %v2156_v35, %v2028_v44 }
  0xe7   : > { %993 = vperm.xlu0 %1736, %v1883_v13  }
  0xe8   : > { %v2143_v9 = vpop.permute.xlu1 %568  ;;  %785 = vperm.xlu1 %1731, %v1883_v13   ;;  %v2146_v28 = vpop.permute.xlu0 %571 }
  0xeb   : > { %1054 = vperm.xlu0 %1736, %v1921_v21  }
  0xec   : > { %v2151_v33 = vpop.permute.xlu1 %574  ;;  %846 = vperm.xlu1 %1731, %v1921_v21   ;;  %v578_v6 = vpop.permute.xlu0 %577  ;;  %v2742_v21 = vmov 3  }
  0xed   : > { %vm611_vm14 = vcmp.eq.s32.totalorder %v2149_v34, %v578_v6  ;;  %vm612_vm15 = vcmp.eq.s32.totalorder %v2156_v35, %v578_v6 }
  0xef   : > { %1086 = vperm.xlu0 %1736, %v1953_v29  }
  0xf0   : > { %v2158_v4 = vpop.permute.xlu1 %580  ;;  %878 = vperm.xlu1 %1731, %v1953_v29   ;;  %v2161_v13 = vpop.permute.xlu0 %583 }
  0xf1   : > { %2740 = vst [vmem:[#allocation12_spill] sm:$0xff] %v2158_v4  ;;  %2741 = vst [vmem:[#allocation13_spill] sm:$0xff] %v2161_v13  ;;  %v2743_v4 = vmov 1  }
  0xf3   : > { %975 = vperm.xlu0 %1736, %v1859_v7  }
  0xf4   : > { %v619_v58 = vpop.permute.xlu1 %618  ;;  %1732 = vset.pattern.permute.xlu1 %v2742_v21  ;;  %v2167_v42 = vpop.permute.xlu0 %622 }
  0xf5   : > { %v2173_v29 = vsel %vm585_vm0, %v619_v58, 0.0  ;;  %v2175_v10 = vsel %vm586_vm1, %v619_v58, 0.0  ;;  %969 = vperm.xlu1 %1732, %v1845_v5   ;;  %vm599_vm0 = vcmp.eq.s32.totalorder %v2149_v34, %v2138_v3  ;;  %vm600_vm1 = vcmp.eq.s32.totalorder %v2156_v35, %v2138_v3 }
  0xf6   : > { %v492_v3 = vsel %vm380_vm3, %v2088_v54, 0.0  ;;  %vm364_vm3 = vcmp.eq.s32.totalorder %v2156_v35, %v2013_v39 }
  0xf7   : > { %1058 = vperm.xlu0 %1736, %v1932_v24  }
  0xf8   : > { %v651_v45 = vpop.permute.xlu1 %650  ;;  %v655_v43 = vpop.permute.xlu0 %654 }
  0xf9   : > { %v697_v58 = vsel %vm601_vm6, %v651_v45, 0.0  ;;  %v698_v26 = vsel %vm602_vm7, %v651_v45, 0.0  ;;  %v699_v13 = vsel %vm603_vm4, %v655_v43, 0.0  ;;  %v700_v5 = vsel %vm604_vm5, %v655_v43, 0.0  ;;  %990 = vperm.xlu1 %1732, %v1886_v14  }
  0xfa   : > { %v2188_v20 = vadd.f32 %v697_v58, %v489_v19  ;;  %v2190_v50 = vadd.f32 %v698_v26, %v490_v2  ;;  %v481_v26 = vsel %vm369_vm10, %v2072_v61, 0.0  ;;  %vm361_vm4 = vcmp.eq.s32.totalorder %v2149_v34, %v2007_v37 }
  0xfb   : > { %1090 = vperm.xlu0 %1736, %v1964_v32   ;;  %vm362_vm5 = vcmp.eq.s32.totalorder %v2156_v35, %v2007_v37 }
  0xfc   : > { %v631_v55 = vpop.permute.xlu0 %630 }
  0xfd   : > { %v2193_v18 = vsel %vm591_vm8, %v631_v55, 0.0  ;;  %v2195_v11 = vsel %vm592_vm9, %v631_v55, 0.0  ;;  %1050 = vperm.xlu1 %1732, %v1924_v22   ;;  %v747_v43 = vpop.permute.xlu1 %746 }
  0xfe   : > { %vm793_vm8 = vcmp.eq.s32.totalorder %v2149_v34, %v747_v43  ;;  %vm794_vm9 = vcmp.eq.s32.totalorder %v2156_v35, %v747_v43 }
 0x100   : > { %v635_v14 = vpop.permute.xlu0 %634 }
 0x101   : > { %v689_v2 = vsel %vm593_vm12, %v635_v14, 0.0  ;;  %v690_v22 = vsel %vm594_vm13, %v635_v14, 0.0  ;;  %1082 = vperm.xlu1 %1732, %v1956_v30   ;;  %v771_v19 = vpop.permute.xlu1 %770  ;;  %vm381_vm12 = vcmp.eq.s32.totalorder %v2149_v34, %v2037_v47  ;;  %vm382_vm13 = vcmp.eq.s32.totalorder %v2156_v35, %v2037_v47 }
 0x102   : > { %v2211_v41 = vadd.f32 %v689_v2, %v481_v26  ;;  %v2213_v45 = vadd.f32 %v690_v22, %v482_v63  ;;  %v732_v2 = vadd.f32 %v700_v5, %v492_v3  ;;  %vm809_vm10 = vcmp.eq.s32.totalorder %v2149_v34, %v771_v19 }
 0x103   : > { %vm810_vm11 = vcmp.eq.s32.totalorder %v2156_v35, %v771_v19 }
 0x104   : > { %v671_v58 = vpop.permute.xlu0 %670 }
 0x105   : > { %v2215_v27 = vsel %vm611_vm14, %v671_v58, 0.0  ;;  %v2217_v55 = vsel %vm612_vm15, %v671_v58, 0.0  ;;  %1733 = vset.pattern.permute.xlu1 %v2743_v4  ;;  %v774_v61 = vpop.permute.xlu1 %773  ;;  %v491_v4 = vsel %vm379_vm2, %v2088_v54, 0.0  ;;  %v474_v54 = vsel %vm362_vm5, %v2056_v53, 0.0 }
 0x106   : > { %642 = vperm.xlu1 %1733, %v1932_v24   ;;  %v731_v63 = vadd.f32 %v699_v13, %v491_v4  ;;  %vm811_vm6 = vcmp.eq.s32.totalorder %v2149_v34, %v774_v61  ;;  %vm812_vm7 = vcmp.eq.s32.totalorder %v2156_v35, %v774_v61  ;;  %v714_v5 = vadd.f32 %v2175_v10, %v474_v54 }
 0x107   : > { %vm605_vm14 = vcmp.eq.s32.totalorder %v2149_v34, %v2143_v9  ;;  %vm606_vm15 = vcmp.eq.s32.totalorder %v2156_v35, %v2143_v9  ;;  %vm363_vm2 = vcmp.eq.s32.totalorder %v2149_v34, %v2013_v39  ;;  %vm368_vm5 = vcmp.eq.s32.totalorder %v2156_v35, %v2010_v38 }
 0x108   : > { %v647_v30 = vpop.permute.xlu0 %646 }
 0x109   : > { %v2225_v6 = vsel %vm599_vm0, %v647_v30, 0.0  ;;  %v2227_v14 = vsel %vm600_vm1, %v647_v30, 0.0  ;;  %v2229_v26 = vpop.permute.xlu1 %830 }
 0x10a   : > { %2744 = vst [vmem:[#allocation14_spill] sm:$0xff] %v2225_v6  ;;  %2745 = vst [vmem:[#allocation15_spill] sm:$0xff] %v2227_v14  ;;  %674 = vperm.xlu1 %1733, %v1964_v32   ;;  %v473_v6 = vsel %vm361_vm4, %v2056_v53, 0.0  ;;  %vm367_vm4 = vcmp.eq.s32.totalorder %v2149_v34, %v2010_v38  ;;  %v475_v38 = vsel %vm363_vm2, %v2054_v52, 0.0  ;;  %vm607_vm2 = vcmp.eq.s32.totalorder %v2149_v34, %v2146_v28 }
 0x10b   : > { %v713_v13 = vadd.f32 %v2173_v29, %v473_v6 }
 0x10d   : > { %v863_v22 = vpop.permute.xlu1 %862  ;;  %v2244_v58 = vpop.permute.xlu0 %749 }
 0x10e   : > { %v907_v44 = vsel %vm811_vm6, %v863_v22, 0.0  ;;  %v908_v30 = vsel %vm812_vm7, %v863_v22, 0.0  ;;  %678 = vperm.xlu1 %1733, %v1961_v31   ;;  %v2746_v22 = vmov 2   ;;  %vm365_vm6 = vcmp.eq.s32.totalorder %v2149_v34, %v2004_v36 }
 0x10f   : > { %v2247_v14 = vadd.f32 %v907_v44, %v731_v63  ;;  %v2249_v37 = vadd.f32 %v908_v30, %v732_v2  ;;  %vm366_vm7 = vcmp.eq.s32.totalorder %v2156_v35, %v2004_v36 }
 0x111   : > { %v827_v61 = vpop.permute.xlu0 %826 }
 0x112   : > { %v889_v4 = vsel %vm793_vm8, %v827_v61, 0.0  ;;  %v890_v3 = vsel %vm794_vm9, %v827_v61, 0.0  ;;  %1735 = vset.pattern.permute.xlu1 %v2746_v22  ;;  %v2258_v63 = vpop.permute.xlu1 %957  ;;  %vm383_vm8 = vcmp.eq.s32.totalorder %v2149_v34, %v2035_v46  ;;  %vm384_vm9 = vcmp.eq.s32.totalorder %v2156_v35, %v2035_v46 }
 0x113   : > { %v2260_v2 = vadd.f32 %v889_v4, %v713_v13  ;;  %v2262_v44 = vadd.f32 %v890_v3, %v714_v5  ;;  %767 = vperm.xlu1 %1735, %v1859_v7  }
 0x115   : > { %v859_v53 = vpop.permute.xlu0 %858 }
 0x116   : > { %v905_v10 = vsel %vm809_vm10, %v859_v53, 0.0  ;;  %v906_v29 = vsel %vm810_vm11, %v859_v53, 0.0  ;;  %v2267_v43 = vpop.permute.xlu1 %978  ;;  %vm385_vm10 = vcmp.eq.s32.totalorder %v2149_v34, %v2043_v49  ;;  %vm386_vm11 = vcmp.eq.s32.totalorder %v2156_v35, %v2043_v49 }
 0x117   : > { %v2270_v6 = vadd.f32 %v905_v10, %v2188_v20  ;;  %v2273_v30 = vadd.f32 %v906_v29, %v2190_v50  ;;  %788 = vperm.xlu1 %1735, %v1894_v16   ;;  %v494_v20 = vsel %vm382_vm13, %v2098_v59, 0.0  ;;  %vm588_vm13 = vcmp.eq.s32.totalorder %v2156_v35, %v2120_v62 }
 0x118   : > { %v2406_v36 = vsel %vm386_vm11, %v2106_v0, 0.0 }
 0x119   : > { %v2276_v54 = vpop.permute.xlu0 %752 }
 0x11a   : > { %v2278_v7 = vpop.permute.xlu1 %1034  ;;  %vm798_vm11 = vcmp.eq.s32.totalorder %v2156_v35, %v2276_v54 }
 0x11b   : > { %850 = vperm.xlu1 %1735, %v1932_v24  }
 0x11d   : > { %v2281_v19 = vpop.permute.xlu0 %779 }
 0x11e   : > { %v2283_v13 = vpop.permute.xlu1 %1066 }
 0x11f   : > { %882 = vperm.xlu1 %1735, %v1964_v32  }
 0x121   : > { %v2286_v5 = vpop.permute.xlu0 %838 }
 0x123   : > { %1737 = vset.pattern.permute.xlu1 %v2742_v21  ;;  %v2289_v50 = vpop.permute.xlu1 %626  ;;  %v493_v21 = vsel %vm381_vm12, %v2098_v59, 0.0  ;;  %vm587_vm12 = vcmp.eq.s32.totalorder %v2149_v34, %v2120_v62  ;;  %v478_v62 = vsel %vm366_vm7, %v2064_v57, 0.0 }
 0x124   : > { %972 = vperm.xlu1 %1737, %v1862_v8  }
 0x125   : > { %v2296_v24 = vpop.permute.xlu0 %870 }
 0x127   : > { %v659_v32 = vpop.permute.xlu1 %658 }
 0x128   : > { %v701_v8 = vsel %vm605_vm14, %v659_v32, 0.0  ;;  %v702_v61 = vsel %vm606_vm15, %v659_v32, 0.0  ;;  %996 = vperm.xlu1 %1737, %v1894_v16   ;;  %vm795_vm14 = vcmp.eq.s32.totalorder %v2149_v34, %v2244_v58  ;;  %vm796_vm15 = vcmp.eq.s32.totalorder %v2156_v35, %v2244_v58 }
 0x129   : > { %v2305_v4 = vadd.f32 %v701_v8, %v493_v21  ;;  %v2307_v47 = vadd.f32 %v702_v61, %v494_v20  ;;  %v2309_v3 = vpop.permute.xlu0 %761  ;;  %v476_v8 = vsel %vm364_vm3, %v2054_v52, 0.0  ;;  %v479_v61 = vsel %vm367_vm4, %v2062_v56, 0.0 }
 0x12a   : > { %v684_v52 = vsel %vm588_vm13, %v2167_v42, 0.0  ;;  %vm608_vm3 = vcmp.eq.s32.totalorder %v2156_v35, %v2146_v28  ;;  %v891_v49 = vsel %vm795_vm14, %v2229_v26, 0.0  ;;  %vm1017_vm4 = vcmp.eq.s32.totalorder %v2149_v34, %v2267_v43 }
 0x12b   : > { %v2311_v22 = vpop.permute.xlu1 %662  ;;  %vm816_vm13 = vcmp.eq.s32.totalorder %v2156_v35, %v2281_v19 }
 0x12c   : > { %999 = vperm.xlu1 %1737, %v1891_v15  }
 0x12d   : > { %v2314_v9 = vpop.permute.xlu0 %842 }
 0x130   : > { %1062 = vperm.xlu1 %1737, %v1929_v23   ;;  %v2317_v53 = vpop.permute.xlu1 %755 }
 0x131   : > { %v2319_v59 = vpop.permute.xlu0 %874  ;;  %vm799_vm14 = vcmp.eq.s32.totalorder %v2149_v34, %v2317_v53 }
 0x134   : > { %1094 = vperm.xlu1 %1737, %v1961_v31   ;;  %v2322_v16 = vpop.permute.xlu1 %776 }
 0x135   : > { %v2324_v10 = vpop.permute.xlu0 %764 }
 0x136   : > { %2747 = vst [vmem:[#allocation16_spill] sm:$0xff] %v2324_v10  ;;  %v2394_v10 = vsel %vm384_vm9, %v2095_v1, 0.0  ;;  %vm1004_vm9 = vcmp.eq.s32.totalorder %v2156_v35, %v2258_v63 }
 0x138   : > { %v2326_v29 = vpop.permute.xlu1 %834 }
 0x139   : > { %v792_v32 = vpop.permute.xlu0 %791 }
 0x13a   : > { %vm823_vm0 = vcmp.eq.s32.totalorder %v2149_v34, %v792_v32  ;;  %vm824_vm1 = vcmp.eq.s32.totalorder %v2156_v35, %v792_v32  ;;  %v480_v32 = vsel %vm368_vm5, %v2062_v56, 0.0  ;;  %v477_v56 = vsel %vm365_vm6, %v2064_v57, 0.0 }
 0x13b   : > { %v716_v57 = vadd.f32 %v684_v52, %v476_v8  ;;  %vm1018_vm5 = vcmp.eq.s32.totalorder %v2156_v35, %v2267_v43  ;;  %v720_v8 = vadd.f32 %v2195_v11, %v480_v32 }
 0x13c   : > { %v2328_v21 = vpop.permute.xlu1 %866 }
 0x13d   : > { %v2330_v15 = vpop.permute.xlu0 %854 }
 0x13e   : > { %2748 = vst [vmem:[#allocation17_spill] sm:$0xff] %v2330_v15 }
 0x141   : > { %v2346_v23 = vpop.permute.xlu1 %960  ;;  %v887_v31 = vpop.permute.xlu0 %886 }
 0x142   : > { %v2352_v39 = vsel %vm823_vm0, %v887_v31, 0.0  ;;  %v2354_v20 = vsel %vm824_vm1, %v887_v31, 0.0  ;;  %v683_v31 = vsel %vm587_vm12, %v2167_v42, 0.0  ;;  %v2388_v42 = vsel %vm383_vm8, %v2095_v1, 0.0 }
 0x143   : > { %2749 = vst [vmem:[#allocation18_spill] sm:$0xff] %v2352_v39  ;;  %2750 = vst [vmem:[#allocation19_spill] sm:$0xff] %v2354_v20  ;;  %v2400_v39 = vsel %vm385_vm10, %v2106_v0, 0.0  ;;  %vm589_vm0 = vcmp.eq.s32.totalorder %v2149_v34, %v2125_v17  ;;  %vm590_vm1 = vcmp.eq.s32.totalorder %v2156_v35, %v2125_v17  ;;  %v715_v46 = vadd.f32 %v683_v31, %v475_v38 }
 0x144   : > { %v892_v1 = vsel %vm796_vm15, %v2229_v26, 0.0  ;;  %v719_v38 = vadd.f32 %v2193_v18, %v479_v61  ;;  %v1113_v31 = vsel %vm1017_vm4, %v2283_v13, 0.0  ;;  %v1114_v26 = vsel %vm1018_vm5, %v2283_v13, 0.0 }
 0x145   : > { %v2374_v15 = vpop.permute.xlu1 %984  ;;  %v923_v52 = vadd.f32 %v891_v49, %v715_v46  ;;  %v924_v51 = vadd.f32 %v892_v1, %v716_v57  ;;  %vm1003_vm8 = vcmp.eq.s32.totalorder %v2149_v34, %v2258_v63  ;;  %vm797_vm10 = vcmp.eq.s32.totalorder %v2149_v34, %v2276_v54 }
 0x146   : > { %v955_v20 = vpop.permute.xlu0 %954  ;;  %v2447_v43 = vadd.f32 %v1113_v31, %v2270_v6  ;;  %vm815_vm12 = vcmp.eq.s32.totalorder %v2149_v34, %v2281_v19  ;;  %v685_v61 = vsel %vm589_vm0, %v2289_v50, 0.0  ;;  %v686_v6 = vsel %vm590_vm1, %v2289_v50, 0.0 }
 0x147   : > { %vm1001_vm6 = vcmp.eq.s32.totalorder %v2149_v34, %v955_v20  ;;  %vm1002_vm7 = vcmp.eq.s32.totalorder %v2156_v35, %v955_v20  ;;  %v1146_v20 = vadd.f32 %v1114_v26, %v2273_v30  ;;  %vm800_vm15 = vcmp.eq.s32.totalorder %v2156_v35, %v2317_v53 }
 0x148   : > { %v1097_v11 = vsel %vm1001_vm6, %v2278_v7, 0.0  ;;  %v1098_v18 = vsel %vm1002_vm7, %v2278_v7, 0.0  ;;  %v717_v49 = vadd.f32 %v685_v61, %v477_v56  ;;  %v718_v1 = vadd.f32 %v686_v6, %v478_v62 }
 0x149   : > { %v2430_v0 = vpop.permute.xlu1 %987  ;;  %v1129_v32 = vadd.f32 %v1097_v11, %v2260_v2  ;;  %v1130_v17 = vadd.f32 %v1098_v18, %v2262_v44  ;;  %v703_v2 = vsel %vm607_vm2, %v2311_v22, 0.0  ;;  %v704_v63 = vsel %vm608_vm3, %v2311_v22, 0.0 }
 0x14a   : > { %v982_v58 = vpop.permute.xlu0 %981  ;;  %vm609_vm4 = vcmp.eq.s32.totalorder %v2149_v34, %v2151_v33  ;;  %vm610_vm5 = vcmp.eq.s32.totalorder %v2156_v35, %v2151_v33  ;;  %v896_v44 = vsel %vm800_vm15, %v2286_v5, 0.0  ;;  %v911_v62 = vsel %vm815_vm12, %v2296_v24, 0.0 }
 0x14b   : > { %vm1019_vm0 = vcmp.eq.s32.totalorder %v2149_v34, %v982_v58  ;;  %vm1020_vm1 = vcmp.eq.s32.totalorder %v2156_v35, %v982_v58  ;;  %v912_v26 = vsel %vm816_vm13, %v2296_v24, 0.0  ;;  %v894_v11 = vsel %vm798_vm11, %v2326_v29, 0.0 }
 0x14c   : > { %v735_v24 = vadd.f32 %v703_v2, %v2388_v42  ;;  %v736_v58 = vadd.f32 %v704_v63, %v2394_v10  ;;  %v928_v6 = vadd.f32 %v896_v44, %v720_v8  ;;  %vm813_vm2 = vcmp.eq.s32.totalorder %v2149_v34, %v2322_v16 }
 0x14d   : > { %v1047_v13 = vpop.permute.xlu1 %1046  ;;  %vm814_vm3 = vcmp.eq.s32.totalorder %v2156_v35, %v2322_v16  ;;  %v909_v10 = vsel %vm813_vm2, %v2328_v21, 0.0  ;;  %vm1024_vm11 = vcmp.eq.s32.totalorder %v2156_v35, %v2430_v0  ;;  %vm1021_vm12 = vcmp.eq.s32.totalorder %v2149_v34, %v2374_v15 }
 0x14e   : > { %v1039_v7 = vpop.permute.xlu0 %1038  ;;  %v910_v42 = vsel %vm814_vm3, %v2328_v21, 0.0  ;;  %v941_v2 = vadd.f32 %v909_v10, %v2305_v4  ;;  %vm1022_vm13 = vcmp.eq.s32.totalorder %v2156_v35, %v2374_v15  ;;  %vm371_vm2 = vcmp.eq.s32.totalorder %v2149_v34, %v2016_v40 }
 0x14f   : > { %v1099_v30 = vsel %vm1003_vm8, %v1039_v7, 0.0  ;;  %v1100_v46 = vsel %vm1004_vm9, %v1039_v7, 0.0  ;;  %vm1005_vm8 = vcmp.eq.s32.totalorder %v2149_v34, %v2346_v23  ;;  %vm1006_vm9 = vcmp.eq.s32.totalorder %v2156_v35, %v2346_v23 }
 0x150   : > { %v1131_v50 = vadd.f32 %v1099_v30, %v923_v52  ;;  %v1132_v57 = vadd.f32 %v1100_v46, %v924_v51  ;;  %v895_v51 = vsel %vm799_vm14, %v2286_v5, 0.0  ;;  %v893_v5 = vsel %vm797_vm10, %v2326_v29, 0.0 }
 0x151   : > { %v1079_v31 = vpop.permute.xlu1 %1078  ;;  %v927_v61 = vadd.f32 %v895_v51, %v719_v38  ;;  %vm1023_vm10 = vcmp.eq.s32.totalorder %v2149_v34, %v2430_v0  ;;  %v942_v63 = vadd.f32 %v910_v42, %v2307_v47  ;;  %v944_v51 = vadd.f32 %v912_v26, %v736_v58 }
 0x152   : > { %v1071_v56 = vpop.permute.xlu0 %1070  ;;  %v1178_v28 = vpack.c.bf16 %v1132_v57, %v1130_v17  ;;  %v1177_v22 = vpack.c.bf16 %v1131_v50, %v1129_v32  ;;  %v926_v32 = vadd.f32 %v894_v11, %v718_v1  ;;  %v1119_v16 = vsel %vm1023_vm10, %v1079_v31, 0.0 }
 0x153   : > { %v1115_v52 = vsel %vm1019_vm0, %v1071_v56, 0.0  ;;  %v1116_v53 = vsel %vm1020_vm1, %v1071_v56, 0.0  ;;  %vm372_vm3 = vcmp.eq.s32.totalorder %v2156_v35, %v2016_v40 }
 0x154   : > { %v1147_v18 = vadd.f32 %v1115_v52, %v2247_v14  ;;  %1353 = vmatprep.mubr.bf16.mxu0 %v1178_v28  ;;  %v1148_v19 = vadd.f32 %v1116_v53, %v2249_v37  ;;  %v925_v37 = vadd.f32 %v893_v5, %v717_v49 }
 0x155   : > { %1354 = vmatmul.mubr.bf16.vlgmr.msra.gmra.mrb[0].mxu0 %v1177_v22 }
 0x156   : > { %v2524_v54 = vpop.permute.xlu1 %638  ;;  %v964_v29 = vpop.permute.xlu0 %963  ;;  %v1186_v14 = vpack.c.bf16 %v1148_v19, %v1146_v20  ;;  %v1185_v7 = vpack.c.bf16 %v1147_v18, %v2447_v43  ;;  %v1120_v43 = vsel %vm1024_vm11, %v1079_v31, 0.0  ;;  %v943_v31 = vadd.f32 %v911_v62, %v735_v24 }
 0x157   : > { %vm1007_vm6 = vcmp.eq.s32.totalorder %v2149_v34, %v964_v29  ;;  %vm1008_vm7 = vcmp.eq.s32.totalorder %v2156_v35, %v964_v29  ;;  %v1152_v28 = vadd.f32 %v1120_v43, %v944_v51 }
 0x158   : > { %v1103_v38 = vsel %vm1007_vm6, %v1047_v13, 0.0  ;;  %v1104_v8 = vsel %vm1008_vm7, %v1047_v13, 0.0  ;;  %1385 = vmatprep.mubr.bf16.mxu1 %v1186_v14  ;;  %vm803_vm6 = vcmp.eq.s32.totalorder %v2149_v34, %v2309_v3  ;;  %vm804_vm7 = vcmp.eq.s32.totalorder %v2156_v35, %v2309_v3 }
 0x159   : > { %1386 = vmatmul.mubr.bf16.vlgmr.msra.gmra.mrb[0].mxu1 %v1185_v7  ;;  %v1135_v20 = vadd.f32 %v1103_v38, %v927_v61  ;;  %v1136_v21 = vadd.f32 %v1104_v8, %v928_v6  ;;  %v484_v6 = vsel %vm372_vm3, %v2070_v60, 0.0 }
 0x15a   : > { %v667_v30 = vpop.permute.xlu1 %666  ;;  %v1043_v13 = vpop.permute.xlu0 %1042 }
 0x15b   : > { %v705_v46 = vsel %vm609_vm4, %v667_v30, 0.0  ;;  %v706_v23 = vsel %vm610_vm5, %v667_v30, 0.0  ;;  %v1101_v17 = vsel %vm1005_vm8, %v1043_v13, 0.0  ;;  %v1102_v50 = vsel %vm1006_vm9, %v1043_v13, 0.0 }
 0x15c   : > { %v737_v57 = vadd.f32 %v705_v46, %v2400_v39  ;;  %v738_v0 = vadd.f32 %v706_v23, %v2406_v36  ;;  %v1133_v49 = vadd.f32 %v1101_v17, %v925_v37  ;;  %v1134_v1 = vadd.f32 %v1102_v50, %v926_v32 }
 0x15d   : > { %v1151_v39 = vadd.f32 %v1119_v16, %v943_v31  ;;  %vm595_vm4 = vcmp.eq.s32.totalorder %v2149_v34, %v2131_v25  ;;  %vm596_vm5 = vcmp.eq.s32.totalorder %v2156_v35, %v2131_v25  ;;  %vm387_vm8 = vcmp.eq.s32.totalorder %v2149_v34, %v2041_v48 }
 0x15e   : > { %v1075_v33 = vpop.permute.xlu0 %1074  ;;  %v1180_v44 = vpack.c.bf16 %v1136_v21, %v1134_v1  ;;  %v1179_v56 = vpack.c.bf16 %v1135_v20, %v1133_v49  ;;  %v691_v58 = vsel %vm595_vm4, %v2524_v54, 0.0  ;;  %v692_v61 = vsel %vm596_vm5, %v2524_v54, 0.0 }
 0x15f   : > { %v1117_v36 = vsel %vm1021_vm12, %v1075_v33, 0.0  ;;  %v1118_v22 = vsel %vm1022_vm13, %v1075_v33, 0.0  ;;  %v759_v52 = vpop.permute.xlu1 %758  ;;  %v724_v14 = vadd.f32 %v692_v61, %v484_v6  ;;  %vm388_vm9 = vcmp.eq.s32.totalorder %v2156_v35, %v2041_v48 }
 0x160   : > { %v1149_v53 = vadd.f32 %v1117_v36, %v941_v2  ;;  %v1150_v4 = vadd.f32 %v1118_v22, %v942_v63  ;;  %vm801_vm14 = vcmp.eq.s32.totalorder %v2149_v34, %v759_v52  ;;  %vm802_vm15 = vcmp.eq.s32.totalorder %v2156_v35, %v759_v52  ;;  %1361 = vmatprep.mubr.bf16.mxu0 %v1180_v44 }
 0x161   : > { %v897_v47 = vsel %vm801_vm14, %v2314_v9, 0.0  ;;  %v898_v62 = vsel %vm802_vm15, %v2314_v9, 0.0  ;;  %1362 = vmatmul.mubr.bf16.gmra.mrb[4].mxu0 %v1179_v56  ;;  %v499_v3 = vsel %vm387_vm8, %v2103_v12, 0.0  ;;  %v500_v16 = vsel %vm388_vm9, %v2103_v12, 0.0 }
 0x162   : > { %v2558_v15 = vadd.f32 %v897_v47, %v2211_v41  ;;  %v2561_v26 = vadd.f32 %v898_v62, %v2213_v45  ;;  %v1188_v5 = vpack.c.bf16 %v1152_v28, %v1150_v4  ;;  %v1187_v11 = vpack.c.bf16 %v1151_v39, %v1149_v53  ;;  %v967_v29 = vpop.permute.xlu0 %966  ;;  %v2751_v4 = vld [vmem:[#allocation6_spill] sm:$0xff]  ;;  %v2752_v47 = vld [vmem:[#allocation12_spill] sm:$0xff] }
 0x163   : > { %v783_v18 = vpop.permute.xlu1 %782  ;;  %vm1009_vm14 = vcmp.eq.s32.totalorder %v2149_v34, %v967_v29  ;;  %vm1010_vm15 = vcmp.eq.s32.totalorder %v2156_v35, %v967_v29  ;;  %v739_v48 = vadd.f32 %v2215_v27, %v499_v3  ;;  %v740_v21 = vadd.f32 %v2217_v55, %v500_v16  ;;  %v2761_v3 = vld [vmem:[#allocation8_spill] sm:$0xff] }
 0x164   : > { %vm817_vm0 = vcmp.eq.s32.totalorder %v2149_v34, %v783_v18  ;;  %vm818_vm1 = vcmp.eq.s32.totalorder %v2156_v35, %v783_v18  ;;  %1393 = vmatprep.mubr.bf16.mxu1 %v1188_v5  ;;  %vm390_vm3 = vcmp.eq.s32.totalorder %v2156_v35, %v2751_v4 }
 0x165   : > { %v913_v19 = vsel %vm817_vm0, %v2319_v59, 0.0  ;;  %v914_v24 = vsel %vm818_vm1, %v2319_v59, 0.0  ;;  %1394 = vmatmul.mubr.bf16.gmra.mrb[4].mxu1 %v1187_v11  ;;  %v483_v59 = vsel %vm371_vm2, %v2070_v60, 0.0  ;;  %vm389_vm2 = vcmp.eq.s32.totalorder %v2149_v34, %v2751_v4 }
 0x166   : > { %v2567_v9 = vadd.f32 %v913_v19, %v737_v57  ;;  %v2569_v41 = vadd.f32 %v914_v24, %v738_v0  ;;  %v723_v25 = vadd.f32 %v691_v58, %v483_v59  ;;  %v994_v40 = vpop.permute.xlu0 %993  ;;  %v2756_v58 = vld [vmem:[#allocation9_spill] sm:$0xff] }
 0x167   : > { %v786_v45 = vpop.permute.xlu1 %785  ;;  %vm1027_vm0 = vcmp.eq.s32.totalorder %v2149_v34, %v994_v40  ;;  %vm1028_vm1 = vcmp.eq.s32.totalorder %v2156_v35, %v994_v40  ;;  %v2760_v40 = vld [vmem:[#allocation11_spill] sm:$0xff] }
 0x168   : > { %vm819_vm12 = vcmp.eq.s32.totalorder %v2149_v34, %v786_v45  ;;  %vm820_vm13 = vcmp.eq.s32.totalorder %v2156_v35, %v786_v45 }
 0x16a   : > { %v1055_v8 = vpop.permute.xlu0 %1054 }
 0x16b   : > { %v847_v54 = vpop.permute.xlu1 %846 }
 0x16c   : > { %v899_v7 = vsel %vm803_vm6, %v847_v54, 0.0  ;;  %v900_v37 = vsel %vm804_vm7, %v847_v54, 0.0  ;;  %vm613_vm6 = vcmp.eq.s32.totalorder %v2149_v34, %v2752_v47  ;;  %vm614_vm7 = vcmp.eq.s32.totalorder %v2156_v35, %v2752_v47  ;;  %v2757_v54 = vld [vmem:[#allocation18_spill] sm:$0xff] }
 0x16d   : > { %v931_v32 = vadd.f32 %v899_v7, %v723_v25  ;;  %v932_v10 = vadd.f32 %v900_v37, %v724_v14  ;;  %v2758_v37 = vld [vmem:[#allocation19_spill] sm:$0xff] }
 0x16e   : > { %v1087_v12 = vpop.permute.xlu0 %1086 }
 0x16f   : > { %v879_v42 = vpop.permute.xlu1 %878  ;;  %v1123_v2 = vsel %vm1027_vm0, %v1087_v12, 0.0  ;;  %v1124_v55 = vsel %vm1028_vm1, %v1087_v12, 0.0 }
 0x170   : > { %v915_v43 = vsel %vm819_vm12, %v879_v42, 0.0  ;;  %v916_v20 = vsel %vm820_vm13, %v879_v42, 0.0  ;;  %v2759_v42 = vld [vmem:[#allocation4_spill] sm:$0xff] }
 0x171   : > { %v947_v23 = vadd.f32 %v915_v43, %v739_v48  ;;  %v948_v17 = vadd.f32 %v916_v20, %v740_v21  ;;  %vm373_vm12 = vcmp.eq.s32.totalorder %v2149_v34, %v2759_v42  ;;  %vm374_vm13 = vcmp.eq.s32.totalorder %v2156_v35, %v2759_v42  ;;  %v2762_v20 = vld [vmem:[#allocation16_spill] sm:$0xff] }
 0x172   : > { %v485_v16 = vsel %vm373_vm12, %v2761_v3, 0.0  ;;  %v486_v43 = vsel %vm374_vm13, %v2761_v3, 0.0  ;;  %vm805_vm0 = vcmp.eq.s32.totalorder %v2149_v34, %v2762_v20  ;;  %vm806_vm1 = vcmp.eq.s32.totalorder %v2156_v35, %v2762_v20 }
 0x173   : > { %v1155_v56 = vadd.f32 %v1123_v2, %v947_v23  ;;  %v1156_v39 = vadd.f32 %v1124_v55, %v948_v17  ;;  %v2765_v55 = vld [vmem:[#allocation17_spill] sm:$0xff] }
 0x174   : > { %v970_v38 = vpop.permute.xlu1 %969 }
 0x175   : > { %vm1011_vm10 = vcmp.eq.s32.totalorder %v2149_v34, %v970_v38  ;;  %vm1012_vm11 = vcmp.eq.s32.totalorder %v2156_v35, %v970_v38 }
 0x176   : > { %v1107_v30 = vsel %vm1011_vm10, %v1055_v8, 0.0  ;;  %v1108_v13 = vsel %vm1012_vm11, %v1055_v8, 0.0 }
 0x177   : > { %v1139_v0 = vadd.f32 %v1107_v30, %v931_v32  ;;  %v1140_v49 = vadd.f32 %v1108_v13, %v932_v10 }
 0x178   : > { %v991_v60 = vpop.permute.xlu1 %990 }
 0x179   : > { %vm1025_vm4 = vcmp.eq.s32.totalorder %v2149_v34, %v991_v60  ;;  %vm1026_vm5 = vcmp.eq.s32.totalorder %v2156_v35, %v991_v60 }
 0x17c   : > { %v1051_v46 = vpop.permute.xlu1 %1050 }
 0x17d   : > { %v1105_v50 = vsel %vm1009_vm14, %v1051_v46, 0.0  ;;  %v1106_v57 = vsel %vm1010_vm15, %v1051_v46, 0.0  ;;  %vm597_vm14 = vcmp.eq.s32.totalorder %v2149_v34, %v2760_v40  ;;  %vm598_vm15 = vcmp.eq.s32.totalorder %v2156_v35, %v2760_v40 }
 0x17e   : > { %v1137_v1 = vadd.f32 %v1105_v50, %v2558_v15  ;;  %v1138_v27 = vadd.f32 %v1106_v57, %v2561_v26  ;;  %v2753_v15 = vld [vmem:[#allocation10_spill] sm:$0xff]  ;;  %v976_v57 = vpop.permute.xlu0 %975 }
 0x17f   : > { %v501_v26 = vsel %vm389_vm2, %v2753_v15, 0.0  ;;  %v502_v5 = vsel %vm390_vm3, %v2753_v15, 0.0 }
 0x180   : > { %v1083_v63 = vpop.permute.xlu1 %1082  ;;  %v1182_v31 = vpack.c.bf16 %v1140_v49, %v1138_v27  ;;  %v1181_v51 = vpack.c.bf16 %v1139_v0, %v1137_v1  ;;  %v2763_v49 = vld [vmem:[#allocation3_spill] sm:$0xff] }
 0x181   : > { %v1121_v33 = vsel %vm1025_vm4, %v1083_v63, 0.0  ;;  %v1122_v44 = vsel %vm1026_vm5, %v1083_v63, 0.0  ;;  %vm375_vm2 = vcmp.eq.s32.totalorder %v2149_v34, %v2763_v49  ;;  %vm376_vm3 = vcmp.eq.s32.totalorder %v2156_v35, %v2763_v49  ;;  %v2764_v1 = vld [vmem:[#allocation7_spill] sm:$0xff] }
 0x182   : > { %v1153_v28 = vadd.f32 %v1121_v33, %v2567_v9  ;;  %v1154_v36 = vadd.f32 %v1122_v44, %v2569_v41  ;;  %1369 = vmatprep.mubr.bf16.mxu0 %v1182_v31  ;;  %v2754_v9 = vld [vmem:[#allocation5_spill] sm:$0xff]  ;;  %v487_v27 = vsel %vm375_vm2, %v2764_v1, 0.0  ;;  %v488_v2 = vsel %vm376_vm3, %v2764_v1, 0.0  ;;  %v2767_v44 = vld [vmem:[#allocation15_spill] sm:$0xff] }
 0x183   : > { %1370 = vmatmul.mubr.bf16.gmra.mrb[8].mxu0 %v1181_v51  ;;  %vm391_vm8 = vcmp.eq.s32.totalorder %v2149_v34, %v2754_v9  ;;  %vm392_vm9 = vcmp.eq.s32.totalorder %v2156_v35, %v2754_v9  ;;  %v2755_v41 = vld [vmem:[#allocation13_spill] sm:$0xff]  ;;  %v2766_v51 = vld [vmem:[#allocation14_spill] sm:$0xff] }
 0x184   : > { %v1190_v22 = vpack.c.bf16 %v1156_v39, %v1154_v36  ;;  %v1189_v52 = vpack.c.bf16 %v1155_v56, %v1153_v28  ;;  %vm615_vm10 = vcmp.eq.s32.totalorder %v2149_v34, %v2755_v41  ;;  %vm616_vm11 = vcmp.eq.s32.totalorder %v2156_v35, %v2755_v41  ;;  %v1059_v39 = vpop.permute.xlu0 %1058 }
 0x185   : > { %v643_v53 = vpop.permute.xlu1 %642  ;;  %v503_v61 = vsel %vm391_vm8, %v2756_v58, 0.0  ;;  %v504_v59 = vsel %vm392_vm9, %v2756_v58, 0.0  ;;  %v727_v33 = vadd.f32 %v2766_v51, %v487_v27  ;;  %v728_v56 = vadd.f32 %v2767_v44, %v488_v2 }
 0x186   : > { %1401 = vmatprep.mubr.bf16.mxu1 %v1190_v22  ;;  %v693_v8 = vsel %vm597_vm14, %v643_v53, 0.0  ;;  %v694_v60 = vsel %vm598_vm15, %v643_v53, 0.0  ;;  %vm1015_vm8 = vcmp.eq.s32.totalorder %v2149_v34, %v976_v57  ;;  %vm1016_vm9 = vcmp.eq.s32.totalorder %v2156_v35, %v976_v57 }
 0x187   : > { %1402 = vmatmul.mubr.bf16.gmra.mrb[8].mxu1 %v1189_v52  ;;  %v725_v48 = vadd.f32 %v693_v8, %v485_v16  ;;  %v726_v21 = vadd.f32 %v694_v60, %v486_v43 }
 0x189   : > { %v675_v62 = vpop.permute.xlu1 %674 }
 0x18a   : > { %v709_v11 = vsel %vm613_vm6, %v675_v62, 0.0  ;;  %v710_v18 = vsel %vm614_vm7, %v675_v62, 0.0 }
 0x18b   : > { %v2619_v19 = vadd.f32 %v709_v11, %v501_v26  ;;  %v2621_v24 = vadd.f32 %v710_v18, %v502_v5  ;;  %v1091_v5 = vpop.permute.xlu0 %1090 }
 0x18d   : > { %v679_v45 = vpop.permute.xlu1 %678 }
 0x18e   : > { %v711_v6 = vsel %vm615_vm10, %v679_v45, 0.0  ;;  %v712_v29 = vsel %vm616_vm11, %v679_v45, 0.0 }
 0x18f   : > { %v743_v25 = vadd.f32 %v711_v6, %v503_v61  ;;  %v744_v14 = vadd.f32 %v712_v29, %v504_v59 }
 0x191   : > { %v2634_v7 = vadd.f32 %v2757_v54, %v743_v25  ;;  %v2637_v32 = vadd.f32 %v2758_v37, %v744_v14 }
 0x192   : > { %v768_v10 = vpop.permute.xlu1 %767 }
 0x193   : > { %vm807_vm4 = vcmp.eq.s32.totalorder %v2149_v34, %v768_v10  ;;  %vm808_vm5 = vcmp.eq.s32.totalorder %v2156_v35, %v768_v10 }
 0x194   : > { %v903_v63 = vsel %vm807_vm4, %v2765_v55, 0.0  ;;  %v904_v31 = vsel %vm808_vm5, %v2765_v55, 0.0 }
 0x195   : > { %v935_v36 = vadd.f32 %v903_v63, %v727_v33  ;;  %v936_v22 = vadd.f32 %v904_v31, %v728_v56 }
 0x196   : > { %v789_v38 = vpop.permute.xlu1 %788 }
 0x197   : > { %vm821_vm10 = vcmp.eq.s32.totalorder %v2149_v34, %v789_v38  ;;  %vm822_vm11 = vcmp.eq.s32.totalorder %v2156_v35, %v789_v38 }
 0x19a   : > { %v851_v30 = vpop.permute.xlu1 %850 }
 0x19b   : > { %v901_v13 = vsel %vm805_vm0, %v851_v30, 0.0  ;;  %v902_v12 = vsel %vm806_vm1, %v851_v30, 0.0 }
 0x19c   : > { %v933_v46 = vadd.f32 %v901_v13, %v725_v48  ;;  %v934_v23 = vadd.f32 %v902_v12, %v726_v21 }
 0x19e   : > { %v883_v17 = vpop.permute.xlu1 %882 }
 0x19f   : > { %v917_v4 = vsel %vm821_vm10, %v883_v17, 0.0  ;;  %v918_v47 = vsel %vm822_vm11, %v883_v17, 0.0 }
 0x1a0   : > { %v949_v45 = vadd.f32 %v917_v4, %v2619_v19  ;;  %v950_v58 = vadd.f32 %v918_v47, %v2621_v24 }
 0x1a3   : > { %v973_v50 = vpop.permute.xlu1 %972 }
 0x1a4   : > { %vm1013_vm6 = vcmp.eq.s32.totalorder %v2149_v34, %v973_v50  ;;  %vm1014_vm7 = vcmp.eq.s32.totalorder %v2156_v35, %v973_v50 }
 0x1a5   : > { %v1109_v52 = vsel %vm1013_vm6, %v1059_v39, 0.0  ;;  %v1110_v53 = vsel %vm1014_vm7, %v1059_v39, 0.0 }
 0x1a6   : > { %v1141_v11 = vadd.f32 %v1109_v52, %v933_v46  ;;  %v1142_v18 = vadd.f32 %v1110_v53, %v934_v23 }
 0x1a7   : > { %v997_v0 = vpop.permute.xlu1 %996 }
 0x1a8   : > { %vm1029_vm12 = vcmp.eq.s32.totalorder %v2149_v34, %v997_v0  ;;  %vm1030_vm13 = vcmp.eq.s32.totalorder %v2156_v35, %v997_v0 }
 0x1a9   : > { %v1125_v61 = vsel %vm1029_vm12, %v1091_v5, 0.0  ;;  %v1126_v59 = vsel %vm1030_vm13, %v1091_v5, 0.0 }
 0x1aa   : > { %v1157_v37 = vadd.f32 %v1125_v61, %v949_v45  ;;  %v1158_v10 = vadd.f32 %v1126_v59, %v950_v58 }
 0x1ab   : > { %v1000_v28 = vpop.permute.xlu1 %999 }
 0x1ac   : > { %vm1031_vm14 = vcmp.eq.s32.totalorder %v2149_v34, %v1000_v28  ;;  %vm1032_vm15 = vcmp.eq.s32.totalorder %v2156_v35, %v1000_v28 }
 0x1af   : > { %v1063_v62 = vpop.permute.xlu1 %1062 }
 0x1b0   : > { %v1111_v15 = vsel %vm1015_vm8, %v1063_v62, 0.0  ;;  %v1112_v26 = vsel %vm1016_vm9, %v1063_v62, 0.0 }
 0x1b1   : > { %v1143_v9 = vadd.f32 %v1111_v15, %v935_v36  ;;  %v1144_v41 = vadd.f32 %v1112_v26, %v936_v22 }
 0x1b3   : > { %v1095_v6 = vpop.permute.xlu1 %1094  ;;  %v1184_v29 = vpack.c.bf16 %v1144_v41, %v1142_v18  ;;  %v1183_v25 = vpack.c.bf16 %v1143_v9, %v1141_v11 }
 0x1b4   : > { %v1127_v14 = vsel %vm1031_vm14, %v1095_v6, 0.0  ;;  %v1128_v54 = vsel %vm1032_vm15, %v1095_v6, 0.0 }
 0x1b5   : > { %v1159_v42 = vadd.f32 %v1127_v14, %v2634_v7  ;;  %v1160_v19 = vadd.f32 %v1128_v54, %v2637_v32  ;;  %1377 = vmatprep.mubr.bf16.mxu0 %v1184_v29 }
 0x1b6   : > { %1378 = vmatmul.mubr.bf16.gmra.mrb[12].mxu0 %v1183_v25 }
 0x1b7   : > { %v1191_v24 = vpack.c.bf16 %v1159_v42, %v1157_v37  ;;  %v1192_v40 = vpack.c.bf16 %v1160_v19, %v1158_v10 }
 0x1b9   : > { %1409 = vmatprep.mubr.bf16.mxu1 %v1192_v40 }
 0x1ba   : > { %1410 = vmatmul.mubr.bf16.gmra.mrb[12].mxu1 %v1191_v24 }
 0x228   : > { %v1629_v34 = vpop.f32.mrb[0].mxu0 }
 0x229   : > { %v1630_v35 = vpop.f32.mrb[1].mxu0 }
 0x22a   : > { %v1631_v7 = vadd.f32 %v1630_v35, %v1629_v34  ;;  %v1632_v38 = vpop.f32.mrb[2].mxu0 }
 0x22b   : > { %v1633_v32 = vpop.f32.mrb[3].mxu0 }
 0x22c   : > { %1469 = vst [vmem:[%s2683_s28] sm:$0xff] %v1631_v7  ;;  %v1634_v8 = vadd.f32 %v1633_v32, %v1632_v38  ;;  %v1653_v60 = vpop.f32.mrb[0].mxu1 }
 0x22d   : > { %v1654_v3 = vpop.f32.mrb[1].mxu1 }
 0x22e   : > { %1470 = vst [vmem:[%s2683_s28 + $0x8] sm:$0xff] %v1634_v8  ;;  %v1655_v16 = vadd.f32 %v1654_v3, %v1653_v60  ;;  %v1656_v43 = vpop.f32.mrb[2].mxu1 }
 0x22f   : > { %v1657_v20 = vpop.f32.mrb[3].mxu1 }
 0x230   : > { %1477 = vst [vmem:[%s2683_s28 + $0x40] sm:$0xff] %v1655_v16  ;;  %v1658_v48 = vadd.f32 %v1657_v20, %v1656_v43 }
 0x232   : > { %1478 = vst [vmem:[%s2683_s28 + $0x48] sm:$0xff] %v1658_v48 }
 0x234   : > { %v1635_v21 = vpop.f32.mrb[4].mxu0 }
 0x235   : > { %v1636_v30 = vpop.f32.mrb[5].mxu0 }
 0x236   : > { %v1637_v13 = vadd.f32 %v1636_v30, %v1635_v21  ;;  %v1638_v12 = vpop.f32.mrb[6].mxu0 }
 0x237   : > { %v1639_v46 = vpop.f32.mrb[7].mxu0 }
 0x238   : > { %1471 = vst [vmem:[%s2683_s28 + $0x10] sm:$0xff] %v1637_v13  ;;  %v1640_v23 = vadd.f32 %v1639_v46, %v1638_v12  ;;  %v1659_v17 = vpop.f32.mrb[4].mxu1 }
 0x239   : > { %v1660_v50 = vpop.f32.mrb[5].mxu1 }
 0x23a   : > { %1472 = vst [vmem:[%s2683_s28 + $0x18] sm:$0xff] %v1640_v23  ;;  %v1661_v57 = vadd.f32 %v1660_v50, %v1659_v17  ;;  %v1662_v0 = vpop.f32.mrb[6].mxu1 }
 0x23b   : > { %v1663_v49 = vpop.f32.mrb[7].mxu1 }
 0x23c   : > { %1479 = vst [vmem:[%s2683_s28 + $0x50] sm:$0xff] %v1661_v57  ;;  %v1664_v1 = vadd.f32 %v1663_v49, %v1662_v0 }
 0x23e   : > { %1480 = vst [vmem:[%s2683_s28 + $0x58] sm:$0xff] %v1664_v1 }
 0x256   : > { %v1641_v27 = vpop.f32.mrb[8].mxu0 }
 0x257   : > { %v1642_v2 = vpop.f32.mrb[9].mxu0 }
 0x258   : > { %v1643_v55 = vadd.f32 %v1642_v2, %v1641_v27  ;;  %v1644_v63 = vpop.f32.mrb[10].mxu0 }
 0x259   : > { %v1645_v31 = vpop.f32.mrb[11].mxu0 }
 0x25a   : > { %1473 = vst [vmem:[%s2683_s28 + $0x20] sm:$0xff] %v1643_v55  ;;  %v1646_v51 = vadd.f32 %v1645_v31, %v1644_v63  ;;  %v1665_v33 = vpop.f32.mrb[8].mxu1 }
 0x25b   : > { %v1666_v44 = vpop.f32.mrb[9].mxu1 }
 0x25c   : > { %1474 = vst [vmem:[%s2683_s28 + $0x28] sm:$0xff] %v1646_v51  ;;  %v1667_v56 = vadd.f32 %v1666_v44, %v1665_v33  ;;  %v1668_v39 = vpop.f32.mrb[10].mxu1 }
 0x25d   : > { %v1669_v28 = vpop.f32.mrb[11].mxu1 }
 0x25e   : > { %1481 = vst [vmem:[%s2683_s28 + $0x60] sm:$0xff] %v1667_v56  ;;  %v1670_v36 = vadd.f32 %v1669_v28, %v1668_v39 }
 0x260   : > { %1482 = vst [vmem:[%s2683_s28 + $0x68] sm:$0xff] %v1670_v36 }
 0x289   : > { %v1647_v22 = vpop.f32.mrb[12].mxu0 }
 0x28a   : > { %v1648_v52 = vpop.f32.mrb[13].mxu0 }
 0x28b   : > { %v1649_v53 = vadd.f32 %v1648_v52, %v1647_v22  ;;  %v1650_v4 = vpop.f32.mrb[14].mxu0 }
 0x28c   : > { %v1651_v47 = vpop.f32.mrb[15].mxu0 }
 0x28d   : > { %1475 = vst [vmem:[%s2683_s28 + $0x30] sm:$0xff] %v1649_v53  ;;  %v1652_v62 = vadd.f32 %v1651_v47, %v1650_v4  ;;  %v1671_v15 = vpop.f32.mrb[12].mxu1 }
 0x28e   : > { %v1672_v26 = vpop.f32.mrb[13].mxu1 }
 0x28f   : > { %1476 = vst [vmem:[%s2683_s28 + $0x38] sm:$0xff] %v1652_v62  ;;  %v1673_v5 = vadd.f32 %v1672_v26, %v1671_v15  ;;  %v1674_v11 = vpop.f32.mrb[14].mxu1 }
 0x290   : > { %v1675_v18 = vpop.f32.mrb[15].mxu1 }
 0x291   : > { %1483 = vst [vmem:[%s2683_s28 + $0x70] sm:$0xff] %v1673_v5  ;;  %v1676_v9 = vadd.f32 %v1675_v18, %v1674_v11 }
 0x293   : > { %1484 = vst [vmem:[%s2683_s28 + $0x78] sm:$0xff] %v1676_v9 }
 0x294 PF: > { %s13_s14 = sadd.s32 1, %s1776_s14   ;;  %s2768_s12 = smov %s1772_s13 }
 0x295   : > { %p10_p5 = scmp.ge.s32.totalorder %s13_s14, 4   ;;  %s2769_s13 = smov %s2771_s15 }
 0x297   :  { %12 = sbr.rel (!%p10_p5) target bundleno = 2 (0x2), region = 76 }

// kernel: _device_forward.3
= control target key start
LH: loop header
LB: loop body
LE: loop exit
PB: predicated region body
PF: predicated region fallthrough
CT: control target
= control target key end

     0   :  { %s1383_s0 = inlined_call_operand.<no memory space> [shape: s32[1], index: 0, kind: input, shape index: {}]   ;;  %s1384_s1 = inlined_call_operand.vmem [shape: f32[256,128], index: 1, kind: input, shape index: {}]   ;;  %s1385_s2 = inlined_call_operand.vmem [shape: f32[128,128], index: 2, kind: input, shape index: {}]   ;;  %s1386_s3 = inlined_call_operand.vmem [shape: f32[1,128], index: 3, kind: input, shape index: {}]   ;;  %s1387_s4 = inlined_call_operand.vmem [shape: f32[1,128], index: 4, kind: input, shape index: {}]   ;;  %s1388_s5 = inlined_call_operand.hbm [shape: f32[256,128], index: 5, kind: output, shape index: {}]  }
   0x1   :  { %v56_v0 = vld [vmem:[%s1385_s2] sm:$0xff]  ;;  %v57_v1 = vld [vmem:[%s1385_s2 + $0x8] sm:$0xff]  ;;  %v58_v2 = vld [vmem:[%s1385_s2 + $0x10] sm:$0xff] }
   0x2   :  { %v764_v3 = vpack.c.bf16 %v57_v1, %v56_v0  ;;  %v59_v4 = vld [vmem:[%s1385_s2 + $0x18] sm:$0xff]  ;;  %v60_v6 = vld [vmem:[%s1385_s2 + $0x20] sm:$0xff]  ;;  %v61_v7 = vld [vmem:[%s1385_s2 + $0x28] sm:$0xff] }
   0x3   :  { %v768_v5 = vpack.c.bf16 %v59_v4, %v58_v2  ;;  %v772_v8 = vpack.c.bf16 %v61_v7, %v60_v6  ;;  %v24_v9 = vld [vmem:[%s1384_s1] sm:$0xff]  ;;  %v62_v10 = vld [vmem:[%s1385_s2 + $0x30] sm:$0xff]  ;;  %v63_v11 = vld [vmem:[%s1385_s2 + $0x38] sm:$0xff] }
   0x4   :  { %765 = vmatprep.subr.bf16.mxu0 %v764_v3  ;;  %796 = vmatprep.subr.bf16.mxu1 %v764_v3  ;;  %v776_v12 = vpack.c.bf16 %v63_v11, %v62_v10  ;;  %v64_v13 = vld [vmem:[%s1385_s2 + $0x40] sm:$0xff]  ;;  %v65_v14 = vld [vmem:[%s1385_s2 + $0x48] sm:$0xff]  ;;  %v66_v17 = vld [vmem:[%s1385_s2 + $0x50] sm:$0xff] }
   0x5   :  { %767 = vmatpush3.bf16.msra.mxu0 %v764_v3  ;;  %804 = vmatpush3.bf16.msra.mxu1 %v764_v3  ;;  %v40_v15 = vld [vmem:[%s1384_s1 + $0x80] sm:$0xff]  ;;  %v780_v16 = vpack.c.bf16 %v65_v14, %v64_v13  ;;  %v67_v18 = vld [vmem:[%s1385_s2 + $0x58] sm:$0xff] }
   0x6   :  { %769 = vmatprep.subr.bf16.mxu0 %v768_v5  ;;  %797 = vmatprep.subr.bf16.mxu1 %v768_v5 }
   0x7   :  { %716 = vmatprep.mubr.f32.mxu0 %v24_v9  ;;  %740 = vmatprep.mubr.f32.mxu1 %v40_v15 }
   0x9   :  { %771 = vmatpush3.bf16.msra.mxu0 %v768_v5  ;;  %805 = vmatpush3.bf16.msra.mxu1 %v768_v5 }
   0xa   :  { %773 = vmatprep.subr.bf16.mxu0 %v772_v8  ;;  %798 = vmatprep.subr.bf16.mxu1 %v772_v8 }
   0xd   :  { %775 = vmatpush3.bf16.msra.mxu0 %v772_v8  ;;  %806 = vmatpush3.bf16.msra.mxu1 %v772_v8 }
   0xe   :  { %777 = vmatprep.subr.bf16.mxu0 %v776_v12  ;;  %799 = vmatprep.subr.bf16.mxu1 %v776_v12 }
  0x11   :  { %779 = vmatpush3.bf16.msra.mxu0 %v776_v12  ;;  %807 = vmatpush3.bf16.msra.mxu1 %v776_v12 }
  0x12   :  { %11 = vsyncpa [#allocation5], 0  ;;  %781 = vmatprep.subr.bf16.mxu0 %v780_v16  ;;  %v784_v19 = vpack.c.bf16 %v67_v18, %v66_v17  ;;  %800 = vmatprep.subr.bf16.mxu1 %v780_v16  ;;  %v68_v20 = vld [vmem:[%s1385_s2 + $0x60] sm:$0xff]  ;;  %v69_v21 = vld [vmem:[%s1385_s2 + $0x68] sm:$0xff]  ;;  %p21_p0 = scmp.gt.s32.totalorder %s1383_s0, 1 }
  0x13   :  { %v788_v22 = vpack.c.bf16 %v69_v21, %v68_v20  ;;  %v70_v23 = vld [vmem:[%s1385_s2 + $0x70] sm:$0xff]  ;;  %v71_v24 = vld [vmem:[%s1385_s2 + $0x78] sm:$0xff]  ;;  %v25_v26 = vld [vmem:[%s1384_s1 + $0x8] sm:$0xff] }
  0x14   :  { %v792_v25 = vpack.c.bf16 %v71_v24, %v70_v23  ;;  %v41_v27 = vld [vmem:[%s1384_s1 + $0x88] sm:$0xff]  ;;  %v26_v28 = vld [vmem:[%s1384_s1 + $0x10] sm:$0xff]  ;;  %v27_v30 = vld [vmem:[%s1384_s1 + $0x18] sm:$0xff]  ;;  %s1390_s0 = smov (!%p21_p0, %s1383_s0), 1 }
  0x15   :  { %783 = vmatpush3.bf16.msra.mxu0 %v780_v16  ;;  %808 = vmatpush3.bf16.msra.mxu1 %v780_v16  ;;  %v42_v29 = vld [vmem:[%s1384_s1 + $0x90] sm:$0xff]  ;;  %v43_v31 = vld [vmem:[%s1384_s1 + $0x98] sm:$0xff]  ;;  %v28_v32 = vld [vmem:[%s1384_s1 + $0x20] sm:$0xff]  ;;  %s23_s14 = scvt.s32.f32 %s1390_s0 }
  0x16   :  { %785 = vmatprep.subr.bf16.mxu0 %v784_v19  ;;  %801 = vmatprep.subr.bf16.mxu1 %v784_v19  ;;  %v44_v33 = vld [vmem:[%s1384_s1 + $0xa0] sm:$0xff]  ;;  %v29_v34 = vld [vmem:[%s1384_s1 + $0x28] sm:$0xff]  ;;  %v30_v36 = vld [vmem:[%s1384_s1 + $0x30] sm:$0xff] }
  0x17   :  { %v45_v35 = vld [vmem:[%s1384_s1 + $0xa8] sm:$0xff]  ;;  %v46_v37 = vld [vmem:[%s1384_s1 + $0xb0] sm:$0xff]  ;;  %v31_v38 = vld [vmem:[%s1384_s1 + $0x38] sm:$0xff] }
  0x18   :  { %v47_v39 = vld [vmem:[%s1384_s1 + $0xb8] sm:$0xff]  ;;  %v32_v40 = vld [vmem:[%s1384_s1 + $0x40] sm:$0xff]  ;;  %v33_v42 = vld [vmem:[%s1384_s1 + $0x48] sm:$0xff] }
  0x19   :  { %787 = vmatpush3.bf16.msra.mxu0 %v784_v19  ;;  %809 = vmatpush3.bf16.msra.mxu1 %v784_v19  ;;  %v48_v41 = vld [vmem:[%s1384_s1 + $0xc0] sm:$0xff]  ;;  %v49_v43 = vld [vmem:[%s1384_s1 + $0xc8] sm:$0xff]  ;;  %v34_v44 = vld [vmem:[%s1384_s1 + $0x50] sm:$0xff] }
  0x1a   :  { %789 = vmatprep.subr.bf16.mxu0 %v788_v22  ;;  %802 = vmatprep.subr.bf16.mxu1 %v788_v22  ;;  %v50_v45 = vld [vmem:[%s1384_s1 + $0xd0] sm:$0xff]  ;;  %v35_v46 = vld [vmem:[%s1384_s1 + $0x58] sm:$0xff]  ;;  %v36_v48 = vld [vmem:[%s1384_s1 + $0x60] sm:$0xff] }
  0x1b   :  { %v51_v47 = vld [vmem:[%s1384_s1 + $0xd8] sm:$0xff]  ;;  %v52_v49 = vld [vmem:[%s1384_s1 + $0xe0] sm:$0xff]  ;;  %v37_v50 = vld [vmem:[%s1384_s1 + $0x68] sm:$0xff] }
  0x1c   :  { %v53_v51 = vld [vmem:[%s1384_s1 + $0xe8] sm:$0xff]  ;;  %v38_v52 = vld [vmem:[%s1384_s1 + $0x70] sm:$0xff]  ;;  %v39_v54 = vld [vmem:[%s1384_s1 + $0x78] sm:$0xff] }
  0x1d   :  { %791 = vmatpush3.bf16.msra.mxu0 %v788_v22  ;;  %810 = vmatpush3.bf16.msra.mxu1 %v788_v22  ;;  %v54_v53 = vld [vmem:[%s1384_s1 + $0xf0] sm:$0xff]  ;;  %v55_v55 = vld [vmem:[%s1384_s1 + $0xf8] sm:$0xff] }
  0x1e   :  { %793 = vmatprep.subr.bf16.mxu0 %v792_v25  ;;  %803 = vmatprep.subr.bf16.mxu1 %v792_v25 }
  0x21   :  { %795 = vmatpush3.bf16.msra.mxu0 %v792_v25  ;;  %811 = vmatpush3.bf16.msra.mxu1 %v792_v25 }
  0x24   :  { %717 = vmatmul.mubr.f32.vlgmr.msra.gmra.mrb[0].mxu0 %v25_v26  ;;  %741 = vmatmul.mubr.f32.vlgmr.msra.gmra.mrb[0].mxu1 %v41_v27 }
  0x25   :  { %719 = vmatprep.mubr.f32.mxu0 %v26_v28  ;;  %743 = vmatprep.mubr.f32.mxu1 %v42_v29 }
  0x28   :  { %720 = vmatmul.mubr.f32.gmra.mrb[2].mxu0 %v27_v30  ;;  %744 = vmatmul.mubr.f32.gmra.mrb[2].mxu1 %v43_v31 }
  0x29   :  { %722 = vmatprep.mubr.f32.mxu0 %v28_v32  ;;  %746 = vmatprep.mubr.f32.mxu1 %v44_v33 }
  0x2c   :  { %723 = vmatmul.mubr.f32.gmra.mrb[4].mxu0 %v29_v34  ;;  %747 = vmatmul.mubr.f32.gmra.mrb[4].mxu1 %v45_v35 }
  0x2d   :  { %725 = vmatprep.mubr.f32.mxu0 %v30_v36  ;;  %749 = vmatprep.mubr.f32.mxu1 %v46_v37 }
  0x30   :  { %726 = vmatmul.mubr.f32.gmra.mrb[6].mxu0 %v31_v38  ;;  %750 = vmatmul.mubr.f32.gmra.mrb[6].mxu1 %v47_v39 }
  0x31   :  { %728 = vmatprep.mubr.f32.mxu0 %v32_v40  ;;  %752 = vmatprep.mubr.f32.mxu1 %v48_v41 }
  0x34   :  { %729 = vmatmul.mubr.f32.gmra.mrb[8].mxu0 %v33_v42  ;;  %753 = vmatmul.mubr.f32.gmra.mrb[8].mxu1 %v49_v43 }
  0x35   :  { %731 = vmatprep.mubr.f32.mxu0 %v34_v44  ;;  %755 = vmatprep.mubr.f32.mxu1 %v50_v45 }
  0x38   :  { %732 = vmatmul.mubr.f32.gmra.mrb[10].mxu0 %v35_v46  ;;  %756 = vmatmul.mubr.f32.gmra.mrb[10].mxu1 %v51_v47 }
  0x39   :  { %734 = vmatprep.mubr.f32.mxu0 %v36_v48  ;;  %758 = vmatprep.mubr.f32.mxu1 %v52_v49 }
  0x3c   :  { %735 = vmatmul.mubr.f32.gmra.mrb[12].mxu0 %v37_v50  ;;  %759 = vmatmul.mubr.f32.gmra.mrb[12].mxu1 %v53_v51 }
  0x3d   :  { %737 = vmatprep.mubr.f32.mxu0 %v38_v52  ;;  %761 = vmatprep.mubr.f32.mxu1 %v54_v53 }
  0x40   :  { %738 = vmatmul.mubr.f32.gmra.mrb[14].mxu0 %v39_v54  ;;  %762 = vmatmul.mubr.f32.gmra.mrb[14].mxu1 %v55_v55 }
  0xf7   :  { %v1020_v56 = vpop.f32.mrb[0].mxu0  ;;  %v1022_v57 = vpop.f32.mrb[0].mxu1 }
  0xf8   :  { %v335_v58 = vmul.f32 %v1020_v56, %v1020_v56  ;;  %v1026_v59 = vpop.f32.mrb[1].mxu0  ;;  %v1028_v60 = vpop.f32.mrb[1].mxu1 }
  0xf9   :  { %v297_v61 = vadd.f32 %v1020_v56, %v1026_v59  ;;  %v334_v62 = vmul.f32 %v1026_v59, %v1026_v59 }
  0xfb   :  { %v366_v63 = vadd.f32 %v335_v58, %v334_v62  ;;  %v1034_v0 = vpop.f32.mrb[2].mxu0  ;;  %v1036_v1 = vpop.f32.mrb[2].mxu1 }
  0xfc   :  { %v1038_v2 = vpop.f32.mrb[3].mxu0  ;;  %v1040_v3 = vpop.f32.mrb[3].mxu1  ;;  %v337_v6 = vmul.f32 %v1034_v0, %v1034_v0 }
  0xfd   :  { %v298_v4 = vadd.f32 %v297_v61, %v1038_v2  ;;  %v336_v5 = vmul.f32 %v1038_v2, %v1038_v2 }
  0xff   :  { %v367_v7 = vadd.f32 %v366_v63, %v336_v5  ;;  %v1047_v8 = vpop.f32.mrb[4].mxu0  ;;  %v299_v9 = vadd.f32 %v1034_v0, %v298_v4  ;;  %v1050_v10 = vpop.f32.mrb[4].mxu1 }
 0x100   :  { %v1052_v11 = vpop.f32.mrb[5].mxu0  ;;  %v1054_v12 = vpop.f32.mrb[5].mxu1  ;;  %v339_v16 = vmul.f32 %v1047_v8, %v1047_v8 }
 0x101   :  { %v300_v13 = vadd.f32 %v299_v9, %v1052_v11  ;;  %v338_v14 = vmul.f32 %v1052_v11, %v1052_v11  ;;  %v368_v15 = vadd.f32 %v367_v7, %v337_v6 }
 0x103   :  { %v369_v17 = vadd.f32 %v368_v15, %v338_v14  ;;  %v1061_v18 = vpop.f32.mrb[6].mxu0  ;;  %v301_v19 = vadd.f32 %v1047_v8, %v300_v13  ;;  %v1064_v20 = vpop.f32.mrb[6].mxu1 }
 0x104   :  { %v1066_v21 = vpop.f32.mrb[7].mxu0  ;;  %v1068_v22 = vpop.f32.mrb[7].mxu1  ;;  %v341_v26 = vmul.f32 %v1061_v18, %v1061_v18 }
 0x105   :  { %v302_v23 = vadd.f32 %v301_v19, %v1066_v21  ;;  %v340_v24 = vmul.f32 %v1066_v21, %v1066_v21  ;;  %v370_v25 = vadd.f32 %v369_v17, %v339_v16  ;;  %v350_v17 = vmul.f32 %v1028_v60, %v1028_v60 }
 0x107   :  { %v371_v27 = vadd.f32 %v370_v25, %v340_v24  ;;  %v1075_v28 = vpop.f32.mrb[8].mxu0  ;;  %v303_v29 = vadd.f32 %v1061_v18, %v302_v23  ;;  %v1078_v30 = vpop.f32.mrb[8].mxu1  ;;  %v351_v24 = vmul.f32 %v1022_v57, %v1022_v57 }
 0x108   :  { %v1080_v31 = vpop.f32.mrb[9].mxu0  ;;  %v1082_v32 = vpop.f32.mrb[9].mxu1  ;;  %v343_v36 = vmul.f32 %v1075_v28, %v1075_v28 }
 0x109   :  { %v304_v33 = vadd.f32 %v303_v29, %v1080_v31  ;;  %v342_v34 = vmul.f32 %v1080_v31, %v1080_v31  ;;  %v372_v35 = vadd.f32 %v371_v27, %v341_v26  ;;  %v352_v27 = vmul.f32 %v1040_v3, %v1040_v3 }
 0x10b   :  { %v373_v37 = vadd.f32 %v372_v35, %v342_v34  ;;  %v1089_v38 = vpop.f32.mrb[10].mxu0  ;;  %v305_v39 = vadd.f32 %v1075_v28, %v304_v33  ;;  %v1092_v40 = vpop.f32.mrb[10].mxu1  ;;  %v353_v34 = vmul.f32 %v1036_v1, %v1036_v1 }
 0x10c   :  { %v1094_v41 = vpop.f32.mrb[11].mxu0  ;;  %v1096_v42 = vpop.f32.mrb[11].mxu1  ;;  %v345_v46 = vmul.f32 %v1089_v38, %v1089_v38 }
 0x10d   :  { %v306_v43 = vadd.f32 %v305_v39, %v1094_v41  ;;  %v344_v44 = vmul.f32 %v1094_v41, %v1094_v41  ;;  %v374_v45 = vadd.f32 %v373_v37, %v343_v36  ;;  %v354_v37 = vmul.f32 %v1054_v12, %v1054_v12 }
 0x10f   :  { %v375_v47 = vadd.f32 %v374_v45, %v344_v44  ;;  %v1103_v48 = vpop.f32.mrb[12].mxu0  ;;  %v307_v49 = vadd.f32 %v1089_v38, %v306_v43  ;;  %v1106_v50 = vpop.f32.mrb[12].mxu1  ;;  %v355_v44 = vmul.f32 %v1050_v10, %v1050_v10 }
 0x110   :  { %v1108_v51 = vpop.f32.mrb[13].mxu0  ;;  %v1110_v52 = vpop.f32.mrb[13].mxu1  ;;  %v347_v58 = vmul.f32 %v1103_v48, %v1103_v48 }
 0x111   :  { %v308_v53 = vadd.f32 %v307_v49, %v1108_v51  ;;  %v346_v54 = vmul.f32 %v1108_v51, %v1108_v51  ;;  %v376_v55 = vadd.f32 %v375_v47, %v345_v46  ;;  %v356_v47 = vmul.f32 %v1068_v22, %v1068_v22 }
 0x113   :  { %v377_v61 = vadd.f32 %v376_v55, %v346_v54  ;;  %v1117_v62 = vpop.f32.mrb[14].mxu0  ;;  %v309_v63 = vadd.f32 %v1103_v48, %v308_v53  ;;  %v1120_v4 = vpop.f32.mrb[14].mxu1  ;;  %v357_v54 = vmul.f32 %v1064_v20, %v1064_v20 }
 0x114   :  { %v1122_v5 = vpop.f32.mrb[15].mxu0  ;;  %v1124_v6 = vpop.f32.mrb[15].mxu1  ;;  %v349_v14 = vmul.f32 %v1117_v62, %v1117_v62 }
 0x115   :  { %v310_v7 = vadd.f32 %v309_v63, %v1122_v5  ;;  %v348_v9 = vmul.f32 %v1122_v5, %v1122_v5  ;;  %v378_v13 = vadd.f32 %v377_v61, %v347_v58  ;;  %v358_v61 = vmul.f32 %v1082_v32, %v1082_v32 }
 0x117   :  { %v311_v15 = vadd.f32 %v1117_v62, %v310_v7  ;;  %v379_v16 = vadd.f32 %v378_v13, %v348_v9  ;;  %v359_v9 = vmul.f32 %v1078_v30, %v1078_v30 }
 0x119   :  { %v380_v19 = vadd.f32 %v379_v16, %v349_v14  ;;  %v312_v23 = vadd.f32 %v311_v15, %v1028_v60  ;;  %v360_v15 = vmul.f32 %v1096_v42, %v1096_v42 }
 0x11b   :  { %v381_v25 = vadd.f32 %v380_v19, %v350_v17  ;;  %v313_v26 = vadd.f32 %v1022_v57, %v312_v23  ;;  %v361_v19 = vmul.f32 %v1092_v40, %v1092_v40 }
 0x11d   :  { %v314_v29 = vadd.f32 %v313_v26, %v1040_v3  ;;  %v382_v33 = vadd.f32 %v381_v25, %v351_v24  ;;  %v362_v25 = vmul.f32 %v1110_v52, %v1110_v52 }
 0x11f   :  { %v383_v35 = vadd.f32 %v382_v33, %v352_v27  ;;  %v315_v36 = vadd.f32 %v1036_v1, %v314_v29  ;;  %v363_v29 = vmul.f32 %v1106_v50, %v1106_v50 }
 0x121   :  { %v316_v39 = vadd.f32 %v315_v36, %v1054_v12  ;;  %v384_v43 = vadd.f32 %v383_v35, %v353_v34  ;;  %v364_v35 = vmul.f32 %v1124_v6, %v1124_v6 }
 0x123   :  { %v385_v45 = vadd.f32 %v384_v43, %v354_v37  ;;  %v317_v46 = vadd.f32 %v1050_v10, %v316_v39  ;;  %v403_v39 = vstv %s23_s14  ;;  %v365_v43 = vmul.f32 %v1120_v4, %v1120_v4 }
 0x124   :  { %815 = vrcp.f32 %v403_v39 }
 0x125   :  { %v318_v49 = vadd.f32 %v317_v46, %v1068_v22  ;;  %v386_v53 = vadd.f32 %v385_v45, %v355_v44 }
 0x127   :  { %v387_v55 = vadd.f32 %v386_v53, %v356_v47  ;;  %v319_v58 = vadd.f32 %v1064_v20, %v318_v49 }
 0x129   :  { %v320_v63 = vadd.f32 %v319_v58, %v1082_v32  ;;  %v388_v7 = vadd.f32 %v387_v55, %v357_v54 }
 0x12b   :  { %v389_v13 = vadd.f32 %v388_v7, %v358_v61  ;;  %v321_v14 = vadd.f32 %v1078_v30, %v320_v63 }
 0x12d   :  { %v322_v16 = vadd.f32 %v321_v14, %v1096_v42  ;;  %v390_v17 = vadd.f32 %v389_v13, %v359_v9 }
 0x12e   :  { %v816_v9 = vpop.eup %815 }
 0x12f   :  { %v391_v23 = vadd.f32 %v390_v17, %v360_v15  ;;  %v323_v24 = vadd.f32 %v1092_v40, %v322_v16 }
 0x131   :  { %v324_v26 = vadd.f32 %v323_v24, %v1110_v52  ;;  %v392_v27 = vadd.f32 %v391_v23, %v361_v19 }
 0x133   :  { %v393_v33 = vadd.f32 %v392_v27, %v362_v25  ;;  %v325_v34 = vadd.f32 %v1106_v50, %v324_v26 }
 0x135   :  { %v326_v36 = vadd.f32 %v325_v34, %v1124_v6  ;;  %v394_v37 = vadd.f32 %v393_v33, %v363_v29 }
 0x137   :  { %v327_v44 = vadd.f32 %v1120_v4, %v326_v36  ;;  %v395_v45 = vadd.f32 %v394_v37, %v364_v35 }
 0x139   :  { %v328_v46 = vrot.slane %v327_v44, 4  ;;  %v396_v47 = vadd.f32 %v395_v45, %v365_v43 }
 0x13b   :  { %v329_v49 = vadd.f32 %v328_v46, %v327_v44  ;;  %v397_v53 = vrot.slane %v396_v47, 4 }
 0x13d   :  { %v330_v54 = vrot.slane %v329_v49, 2  ;;  %v398_v55 = vadd.f32 %v397_v53, %v396_v47 }
 0x13f   :  { %v331_v58 = vadd.f32 %v330_v54, %v329_v49  ;;  %v399_v61 = vrot.slane %v398_v55, 2 }
 0x141   :  { %v332_v63 = vrot.slane %v331_v58, 1  ;;  %v400_v7 = vadd.f32 %v399_v61, %v398_v55 }
 0x143   :  { %v333_v13 = vadd.f32 %v332_v63, %v331_v58  ;;  %v401_v14 = vrot.slane %v400_v7, 1 }
 0x145   :  { %v402_v15 = vadd.f32 %v401_v14, %v400_v7  ;;  %v1186_v16 = vmul.f32 %v816_v9, %v333_v13 }
 0x147   :  { %v406_v17 = vmul.f32 %v816_v9, %v402_v15  ;;  %v407_v19 = vmul.f32 %v1186_v16, %v1186_v16  ;;  %v442_v23 = vsub.f32 %v1124_v6, %v1186_v16  ;;  %v412_v24 = vsub.f32 %v1026_v59, %v1186_v16 }
 0x148   :  { %v413_v25 = vsub.f32 %v1020_v56, %v1186_v16  ;;  %v414_v26 = vsub.f32 %v1038_v2, %v1186_v16  ;;  %v415_v27 = vsub.f32 %v1034_v0, %v1186_v16  ;;  %v416_v29 = vsub.f32 %v1052_v11, %v1186_v16 }
 0x149   :  { %v408_v33 = vsub.f32 %v406_v17, %v407_v19  ;;  %v417_v34 = vsub.f32 %v1047_v8, %v1186_v16  ;;  %v418_v6 = vsub.f32 %v1066_v21, %v1186_v16  ;;  %v419_v59 = vsub.f32 %v1061_v18, %v1186_v16 }
 0x14a   :  { %v420_v56 = vsub.f32 %v1080_v31, %v1186_v16  ;;  %v421_v2 = vsub.f32 %v1075_v28, %v1186_v16  ;;  %v422_v0 = vsub.f32 %v1094_v41, %v1186_v16  ;;  %v423_v11 = vsub.f32 %v1089_v38, %v1186_v16 }
 0x14b   :  { %v409_v35 = vmax.f32 %v408_v33, 0.0  ;;  %v424_v8 = vsub.f32 %v1108_v51, %v1186_v16  ;;  %v425_v21 = vsub.f32 %v1103_v48, %v1186_v16  ;;  %v426_v18 = vsub.f32 %v1122_v5, %v1186_v16 }
 0x14c   :  { %v427_v31 = vsub.f32 %v1117_v62, %v1186_v16  ;;  %v428_v28 = vsub.f32 %v1028_v60, %v1186_v16  ;;  %v429_v41 = vsub.f32 %v1022_v57, %v1186_v16  ;;  %v430_v38 = vsub.f32 %v1040_v3, %v1186_v16 }
 0x14d   :  { %v410_v36 = vadd.f32 1e-05, %v409_v35  ;;  %v431_v51 = vsub.f32 %v1036_v1, %v1186_v16  ;;  %v432_v48 = vsub.f32 %v1054_v12, %v1186_v16  ;;  %v433_v5 = vsub.f32 %v1050_v10, %v1186_v16 }
 0x14e   :  { %v434_v62 = vsub.f32 %v1068_v22, %v1186_v16  ;;  %v435_v60 = vsub.f32 %v1064_v20, %v1186_v16  ;;  %v436_v57 = vsub.f32 %v1082_v32, %v1186_v16  ;;  %v437_v3 = vsub.f32 %v1078_v30, %v1186_v16  ;;  %v1257_v30 = vld [vmem:[%s1386_s3] ss:$0 sm:$0xff]  ;;  %s843_s3 = smov [#allocation4]  }
 0x14f   :  { %817 = vrsqrt.f32 %v410_v36  ;;  %v438_v1 = vsub.f32 %v1096_v42, %v1186_v16  ;;  %v439_v12 = vsub.f32 %v1092_v40, %v1186_v16  ;;  %v440_v10 = vsub.f32 %v1110_v52, %v1186_v16  ;;  %v1262_v40 = vld [vmem:[%s1387_s4] ss:$0 sm:$0xff]  ;;  %s623_s4 = sshll.u32 %s843_s3, 4  ;;  %s1360_s4 = int_to_ptr.vmem [resolvable:$true] %s623_s4 }
 0x150   :  { %v441_v22 = vsub.f32 %v1106_v50, %v1186_v16  ;;  %v443_v20 = vsub.f32 %v1120_v4, %v1186_v16  ;;  %s819_s18 = scalar_lea.vmem %s1360_s4, 4096  ;;  %p824_p2 = scmp.lt.s32.totalorder %s1360_s4, %s1360_s4 }
 0x151   :  { %p820_p1 = scmp.ne.s32.totalorder %s1360_s4, %s819_s18  ;;  %p825_p3 = scmp.lt.s32.totalorder %s819_s18, %s819_s18 }
 0x153   :  { %p826_p4 = por %p825_p3, %p824_p2 }
 0x155   :  { %p827_p5 = pnand %p826_p4, %p820_p1 }
 0x159   :  { %v818_v32 = vpop.eup %817 }
 0x15a   :  { %v474_v37 = vmul.f32 %v818_v32, %v442_v23  ;;  %v444_v42 = vmul.f32 %v818_v32, %v412_v24  ;;  %v445_v39 = vmul.f32 %v818_v32, %v413_v25  ;;  %v446_v43 = vmul.f32 %v818_v32, %v414_v26 }
 0x15b   :  { %v447_v52 = vmul.f32 %v818_v32, %v415_v27  ;;  %v448_v50 = vmul.f32 %v818_v32, %v416_v29  ;;  %v449_v44 = vmul.f32 %v818_v32, %v417_v34  ;;  %v450_v45 = vmul.f32 %v818_v32, %v418_v6 }
 0x15c   :  { %v513_v4 = vmul.f32 %v1257_v30, %v474_v37  ;;  %v451_v46 = vmul.f32 %v818_v32, %v419_v59  ;;  %v452_v47 = vmul.f32 %v818_v32, %v420_v56  ;;  %v453_v49 = vmul.f32 %v818_v32, %v421_v2 }
 0x15d   :  { %v454_v53 = vmul.f32 %v818_v32, %v422_v0  ;;  %v455_v54 = vmul.f32 %v818_v32, %v423_v11  ;;  %v456_v55 = vmul.f32 %v818_v32, %v424_v8  ;;  %v457_v58 = vmul.f32 %v818_v32, %v425_v21 }
 0x15e   :  { %v552_v61 = vadd.f32 %v1262_v40, %v513_v4  ;;  %v458_v63 = vmul.f32 %v818_v32, %v426_v18  ;;  %v459_v7 = vmul.f32 %v818_v32, %v427_v31  ;;  %v460_v9 = vmul.f32 %v818_v32, %v428_v28 }
 0x15f   :  { %v461_v13 = vmul.f32 %v818_v32, %v429_v41  ;;  %v462_v14 = vmul.f32 %v818_v32, %v430_v38  ;;  %v463_v15 = vmul.f32 %v818_v32, %v431_v51  ;;  %v464_v16 = vmul.f32 %v818_v32, %v432_v48 }
 0x160   :  { %v584_v17 = vmax.f32 %v552_v61, 0.0  ;;  %v465_v19 = vmul.f32 %v818_v32, %v433_v5  ;;  %v466_v23 = vmul.f32 %v818_v32, %v434_v62  ;;  %v467_v24 = vmul.f32 %v818_v32, %v435_v60 }
 0x161   :  { %v468_v25 = vmul.f32 %v818_v32, %v436_v57  ;;  %v469_v26 = vmul.f32 %v818_v32, %v437_v3  ;;  %v470_v27 = vmul.f32 %v818_v32, %v438_v1  ;;  %v471_v29 = vmul.f32 %v818_v32, %v439_v12 }
 0x162   :  { %616 = vst [vmem:[#allocation4 + $0xf0] sm:$0xff] %v584_v17  ;;  %v472_v33 = vmul.f32 %v818_v32, %v440_v10  ;;  %v473_v34 = vmul.f32 %v818_v32, %v441_v22  ;;  %v475_v6 = vmul.f32 %v818_v32, %v443_v20  ;;  %v483_v59 = vmul.f32 %v1257_v30, %v444_v42 }
 0x163   :  { %v484_v56 = vmul.f32 %v1257_v30, %v445_v39  ;;  %v485_v2 = vmul.f32 %v1257_v30, %v446_v43  ;;  %v486_v0 = vmul.f32 %v1257_v30, %v447_v52  ;;  %v487_v11 = vmul.f32 %v1257_v30, %v448_v50 }
 0x164   :  { %v488_v35 = vmul.f32 %v1257_v30, %v449_v44  ;;  %v489_v8 = vmul.f32 %v1257_v30, %v450_v45  ;;  %v490_v21 = vmul.f32 %v1257_v30, %v451_v46  ;;  %v491_v18 = vmul.f32 %v1257_v30, %v452_v47 }
 0x165   :  { %v492_v31 = vmul.f32 %v1257_v30, %v453_v49  ;;  %v493_v28 = vmul.f32 %v1257_v30, %v454_v53  ;;  %v494_v41 = vmul.f32 %v1257_v30, %v455_v54  ;;  %v495_v38 = vmul.f32 %v1257_v30, %v456_v55 }
 0x166   :  { %v496_v36 = vmul.f32 %v1257_v30, %v457_v58  ;;  %v497_v51 = vmul.f32 %v1257_v30, %v458_v63  ;;  %v498_v48 = vmul.f32 %v1257_v30, %v459_v7  ;;  %v499_v5 = vmul.f32 %v1257_v30, %v460_v9 }
 0x167   :  { %v500_v62 = vmul.f32 %v1257_v30, %v461_v13  ;;  %v501_v60 = vmul.f32 %v1257_v30, %v462_v14  ;;  %v502_v57 = vmul.f32 %v1257_v30, %v463_v15  ;;  %v503_v3 = vmul.f32 %v1257_v30, %v464_v16 }
 0x168   :  { %v504_v1 = vmul.f32 %v1257_v30, %v465_v19  ;;  %v505_v12 = vmul.f32 %v1257_v30, %v466_v23  ;;  %v506_v10 = vmul.f32 %v1257_v30, %v467_v24  ;;  %v507_v22 = vmul.f32 %v1257_v30, %v468_v25 }
 0x169   :  { %v508_v20 = vmul.f32 %v1257_v30, %v469_v26  ;;  %v509_v32 = vmul.f32 %v1257_v30, %v470_v27  ;;  %v510_v37 = vmul.f32 %v1257_v30, %v471_v29  ;;  %v511_v42 = vmul.f32 %v1257_v30, %v472_v33 }
 0x16a   :  { %v512_v39 = vmul.f32 %v1257_v30, %v473_v34  ;;  %v514_v43 = vmul.f32 %v1257_v30, %v475_v6  ;;  %v522_v52 = vadd.f32 %v1262_v40, %v483_v59  ;;  %v523_v50 = vadd.f32 %v1262_v40, %v484_v56 }
 0x16b   :  { %v524_v44 = vadd.f32 %v1262_v40, %v485_v2  ;;  %v525_v45 = vadd.f32 %v1262_v40, %v486_v0  ;;  %v526_v4 = vadd.f32 %v1262_v40, %v487_v11  ;;  %v527_v46 = vadd.f32 %v1262_v40, %v488_v35 }
 0x16c   :  { %v528_v47 = vadd.f32 %v1262_v40, %v489_v8  ;;  %v529_v49 = vadd.f32 %v1262_v40, %v490_v21  ;;  %v530_v53 = vadd.f32 %v1262_v40, %v491_v18  ;;  %v531_v30 = vadd.f32 %v1262_v40, %v492_v31 }
 0x16d   :  { %v532_v54 = vadd.f32 %v1262_v40, %v493_v28  ;;  %v533_v55 = vadd.f32 %v1262_v40, %v494_v41  ;;  %v534_v58 = vadd.f32 %v1262_v40, %v495_v38  ;;  %v535_v61 = vadd.f32 %v1262_v40, %v496_v36 }
 0x16e   :  { %v536_v63 = vadd.f32 %v1262_v40, %v497_v51  ;;  %v537_v7 = vadd.f32 %v1262_v40, %v498_v48  ;;  %v538_v9 = vadd.f32 %v1262_v40, %v499_v5  ;;  %v539_v13 = vadd.f32 %v1262_v40, %v500_v62 }
 0x16f   :  { %v540_v14 = vadd.f32 %v1262_v40, %v501_v60  ;;  %v1317_v15 = vadd.f32 %v1262_v40, %v502_v57  ;;  %v1320_v16 = vadd.f32 %v1262_v40, %v503_v3  ;;  %v1323_v17 = vadd.f32 %v1262_v40, %v504_v1 }
 0x170   :  { %v1326_v19 = vadd.f32 %v1262_v40, %v505_v12  ;;  %v1329_v23 = vadd.f32 %v1262_v40, %v506_v10  ;;  %v1332_v24 = vadd.f32 %v1262_v40, %v507_v22  ;;  %v1335_v25 = vadd.f32 %v1262_v40, %v508_v20 }
 0x171   :  { %v1338_v26 = vadd.f32 %v1262_v40, %v509_v32  ;;  %v1341_v27 = vadd.f32 %v1262_v40, %v510_v37  ;;  %v1344_v29 = vadd.f32 %v1262_v40, %v511_v42  ;;  %v1347_v33 = vadd.f32 %v1262_v40, %v512_v39 }
 0x172   :  { %v1350_v34 = vadd.f32 %v1262_v40, %v514_v43  ;;  %v554_v6 = vmax.f32 %v522_v52, 0.0  ;;  %v555_v59 = vmax.f32 %v523_v50, 0.0  ;;  %v556_v56 = vmax.f32 %v524_v44, 0.0 }
 0x173   :  { %v557_v2 = vmax.f32 %v525_v45, 0.0  ;;  %v558_v0 = vmax.f32 %v526_v4, 0.0  ;;  %v559_v11 = vmax.f32 %v527_v46, 0.0  ;;  %v560_v35 = vmax.f32 %v528_v47, 0.0 }
 0x174   :  { %v561_v8 = vmax.f32 %v529_v49, 0.0  ;;  %v562_v21 = vmax.f32 %v530_v53, 0.0  ;;  %v563_v18 = vmax.f32 %v531_v30, 0.0  ;;  %v564_v31 = vmax.f32 %v532_v54, 0.0  ;;  %586 = vst [vmem:[#allocation4] sm:$0xff] %v554_v6  ;;  %587 = vst [vmem:[#allocation4 + $0x8] sm:$0xff] %v555_v59 }
 0x175   :  { %588 = vst [vmem:[#allocation4 + $0x10] sm:$0xff] %v556_v56  ;;  %v565_v28 = vmax.f32 %v533_v55, 0.0  ;;  %v566_v41 = vmax.f32 %v534_v58, 0.0  ;;  %v567_v38 = vmax.f32 %v535_v61, 0.0  ;;  %v568_v36 = vmax.f32 %v536_v63, 0.0  ;;  %589 = vst [vmem:[#allocation4 + $0x18] sm:$0xff] %v557_v2 }
 0x176   :  { %590 = vst [vmem:[#allocation4 + $0x20] sm:$0xff] %v558_v0  ;;  %591 = vst [vmem:[#allocation4 + $0x28] sm:$0xff] %v559_v11  ;;  %v569_v40 = vmax.f32 %v537_v7, 0.0  ;;  %v570_v51 = vmax.f32 %v538_v9, 0.0  ;;  %v571_v48 = vmax.f32 %v539_v13, 0.0  ;;  %v572_v5 = vmax.f32 %v540_v14, 0.0 }
 0x177   :  { %592 = vst [vmem:[#allocation4 + $0x30] sm:$0xff] %v560_v35  ;;  %593 = vst [vmem:[#allocation4 + $0x38] sm:$0xff] %v561_v8  ;;  %v573_v62 = vmax.f32 %v1317_v15, 0.0  ;;  %v574_v60 = vmax.f32 %v1320_v16, 0.0  ;;  %v575_v57 = vmax.f32 %v1323_v17, 0.0  ;;  %v576_v3 = vmax.f32 %v1326_v19, 0.0 }
 0x178   :  { %594 = vst [vmem:[#allocation4 + $0x40] sm:$0xff] %v562_v21  ;;  %595 = vst [vmem:[#allocation4 + $0x48] sm:$0xff] %v563_v18  ;;  %v577_v1 = vmax.f32 %v1329_v23, 0.0  ;;  %v578_v12 = vmax.f32 %v1332_v24, 0.0  ;;  %v579_v10 = vmax.f32 %v1335_v25, 0.0  ;;  %v580_v22 = vmax.f32 %v1338_v26, 0.0 }
 0x179   :  { %596 = vst [vmem:[#allocation4 + $0x50] sm:$0xff] %v564_v31  ;;  %597 = vst [vmem:[#allocation4 + $0x58] sm:$0xff] %v565_v28  ;;  %v581_v20 = vmax.f32 %v1341_v27, 0.0  ;;  %v582_v32 = vmax.f32 %v1344_v29, 0.0  ;;  %v583_v37 = vmax.f32 %v1347_v33, 0.0  ;;  %v585_v42 = vmax.f32 %v1350_v34, 0.0 }
 0x17a   :  { %598 = vst [vmem:[#allocation4 + $0x60] sm:$0xff] %v566_v41  ;;  %599 = vst [vmem:[#allocation4 + $0x68] sm:$0xff] %v567_v38 }
 0x17b   :  { %600 = vst [vmem:[#allocation4 + $0x70] sm:$0xff] %v568_v36  ;;  %601 = vst [vmem:[#allocation4 + $0x78] sm:$0xff] %v569_v40 }
 0x17c   :  { %602 = vst [vmem:[#allocation4 + $0x80] sm:$0xff] %v570_v51  ;;  %603 = vst [vmem:[#allocation4 + $0x88] sm:$0xff] %v571_v48 }
 0x17d   :  { %604 = vst [vmem:[#allocation4 + $0x90] sm:$0xff] %v572_v5  ;;  %605 = vst [vmem:[#allocation4 + $0x98] sm:$0xff] %v573_v62 }
 0x17e   :  { %606 = vst [vmem:[#allocation4 + $0xa0] sm:$0xff] %v574_v60  ;;  %607 = vst [vmem:[#allocation4 + $0xa8] sm:$0xff] %v575_v57 }
 0x17f   :  { %608 = vst [vmem:[#allocation4 + $0xb0] sm:$0xff] %v576_v3  ;;  %609 = vst [vmem:[#allocation4 + $0xb8] sm:$0xff] %v577_v1 }
 0x180   :  { %610 = vst [vmem:[#allocation4 + $0xc0] sm:$0xff] %v578_v12  ;;  %611 = vst [vmem:[#allocation4 + $0xc8] sm:$0xff] %v579_v10 }
 0x181   :  { %612 = vst [vmem:[#allocation4 + $0xd0] sm:$0xff] %v580_v22  ;;  %613 = vst [vmem:[#allocation4 + $0xd8] sm:$0xff] %v581_v20 }
 0x182   :  { %614 = vst [vmem:[#allocation4 + $0xe0] sm:$0xff] %v582_v32  ;;  %615 = vst [vmem:[#allocation4 + $0xe8] sm:$0xff] %v583_v37 }
 0x183   :  { %617 = vst [vmem:[#allocation4 + $0xf8] sm:$0xff] %v585_v42 }
 0x184   :  { %830 = shalt.err (!%p827_p5)
}
 0x185   :  { %s831_s21 = scalar_lea.hbm %s1388_s5, 4096 }
 0x186   :  { %p832_p6 = scmp.ne.s32.totalorder %s1388_s5, %s831_s21  ;;  %p835_p7 = scmp.lt.u32.totalorder %s831_s21, %s1388_s5 }
 0x188   :  { %p837_p8 = pnand %p835_p7, %p832_p6 }
 0x18a   :  { %840 = shalt.err (!%p837_p8)
}
 0x18b   :  { %s844_s26 = smov 128   ;;  %s845_s27 = smov 8  }
 0x18c   :  { %629 = dma.vmem_to_hbm [thread:$0]  %s1360_s4, 4096, %s1388_s5, [#allocation5], %s844_s26, %s844_s26, %s845_s27  }
 0x18d   :  { %841 = dma.done.wait [#allocation5], 4096  }
 0x18e   :  { %842 = vsyncadd [#allocation5], 4294963200 }
 0x18f   :  { %633 = vsyncpa [#allocation5], 1 }

</bundles_post_ra>
